<compile_context>
chip_gen: v7x
topology: tpu7x:2x2x1
jax: 0.10.0
libtpu: 0.0.40
codegen_flags: <defaults>
</compile_context>

<pallas_src>
import functools

import jax
import jax.numpy as jnp
from jax.experimental import pallas as pl
from jax.experimental.pallas import tpu as pltpu

INPUT_DIM = 2
HIDDEN_DIM = 128
DEPTH = 4
OUTPUT_DIM = 1
TM = 4096          # default point-tile width on the lane axis (sweep 2048..8192)


def _cdiv(a, b):
    return (a + b - 1) // b


def _round_up(v, m):
    return _cdiv(v, m) * m


def _device_kind():
    try:
        return jax.devices()[0].device_kind.lower()
    except Exception:
        return ""


def _default_dtypes():
    """Returns (mxu_operand_dtype, activation_dtype) per chip generation.

    v6e / v7x: bf16 MXU operands and bf16 activations/tanh (bf16 VPU/EUP).
    v5x      : bf16 MXU operands (bf16-native MXU), f32 activations/tanh.
    unknown  : f32 everywhere (safe fallback).
    """
    kind = _device_kind()
    if ("v6" in kind) or ("v7" in kind) or ("tpu7" in kind) or ("7x" in kind):
        return jnp.bfloat16, jnp.bfloat16
    if "v5" in kind:
        return jnp.bfloat16, jnp.float32
    return jnp.float32, jnp.float32


def _default_vmem_limit_bytes(tm_eff, act_dtype):
    """Scoped-VMEM limit with headroom for the (HIDDEN, tm) intermediates."""
    kind = _device_kind()
    cap = (48 << 20) if (("v7" in kind) or ("7x" in kind) or ("tpu7" in kind)) \
        else (96 << 20)
    act_b = jnp.dtype(act_dtype).itemsize
    est = (3 * HIDDEN_DIM * tm_eff * act_b          # live activation temporaries
           + 2 * HIDDEN_DIM * tm_eff * 4            # f32 MXU accum / head temp
           + 4 * (INPUT_DIM + OUTPUT_DIM) * tm_eff * 4)  # double-buffered I/O
    return int(min(cap, max(32 << 20, 2 * est)))


def pinn_kernel(x_ref, w1t_ref, b1_ref, wh_ref, bh_ref, w5c_ref, b5_ref, o_ref,
                *, act_dtype):
    """One lane-tile of points through the whole 5-layer MLP.

    Points on lanes, features / hidden units on sublanes:
      x_ref   : (INPUT_DIM, tm)                     f32
      w1t_ref : (HIDDEN_DIM, INPUT_DIM)             f32   (= W1.T)
      b1_ref  : (HIDDEN_DIM, 1)                     f32
      wh_ref  : (DEPTH-1, HIDDEN_DIM, HIDDEN_DIM)   mxu dtype (stacked Wk.T)
      bh_ref  : (DEPTH-1, HIDDEN_DIM, 1)            f32
      w5c_ref : (HIDDEN_DIM, OUTPUT_DIM)            f32   (W5 column)
      b5_ref  : (OUTPUT_DIM, 1)                     f32
      o_ref   : (OUTPUT_DIM, tm)                    f32
    """
    x = x_ref[...]
    w1t = w1t_ref[...]

    # Layer 1 (K = INPUT_DIM = 2): rank-1 broadcasts on the VPU — no MXU work,
    # no zero-padded feature axis.
    acc = w1t[:, 0:1] * x[0:1, :]
    for d in range(1, INPUT_DIM):
        acc = acc + w1t[:, d:d + 1] * x[d:d + 1, :]
    h = jnp.tanh((acc + b1_ref[...]).astype(act_dtype))       # (HIDDEN, tm)

    # Hidden layers: MXU matmuls with f32 accumulation; activations (and tanh)
    # stay in act_dtype (bf16 on v6e/v7x -> bf16 EUP, half the VMEM traffic).
    mxu_dtype = wh_ref.dtype
    for l in range(DEPTH - 1):
        a = jnp.dot(wh_ref[l], h.astype(mxu_dtype),
                    preferred_element_type=jnp.float32)       # (HIDDEN, tm) f32
        h = jnp.tanh((a + bh_ref[l]).astype(act_dtype))

    # Output head (1 row): VPU broadcast-multiply + sublane (XLU) reduction in
    # f32 instead of a 1-row MXU matmul padded to the MXU's output width.
    prod = w5c_ref[...] * h.astype(jnp.float32)                # (HIDDEN, tm) f32
    out = jnp.sum(prod, axis=0, keepdims=True) + b5_ref[...]   # (1, tm) f32
    o_ref[...] = out.astype(o_ref.dtype)


def prepare_params(params, mxu_dtype=None):
    """One-time packing of (w, b) pairs into kernel-ready stacks (hoisted)."""
    if mxu_dtype is None:
        mxu_dtype, _ = _default_dtypes()
    (w1, b1), *hidden, (w5, b5) = params
    assert len(hidden) == DEPTH - 1
    w1t = jnp.transpose(w1).astype(jnp.float32)                        # (H, D)
    b1c = b1.reshape(HIDDEN_DIM, 1).astype(jnp.float32)
    wh = jnp.stack([jnp.transpose(w) for (w, _) in hidden]).astype(mxu_dtype)
    bh = jnp.stack([b for (_, b) in hidden]
                   ).reshape(DEPTH - 1, HIDDEN_DIM, 1).astype(jnp.float32)
    w5c = w5.reshape(HIDDEN_DIM, OUTPUT_DIM).astype(jnp.float32)       # (H, 1)
    b5c = b5.reshape(OUTPUT_DIM, 1).astype(jnp.float32)
    return (w1t, b1c, wh, bh, w5c, b5c)


@functools.partial(jax.jit,
                   static_argnames=("tm", "act_dtype", "min_tiles",
                                    "vmem_limit_bytes"))
def pinn_forward(x, packed_params, *, tm=TM, act_dtype=jnp.float32,
                 min_tiles=2, vmem_limit_bytes=None):
    """x: (B, INPUT_DIM, N) float32.  Returns (B, OUTPUT_DIM, N) float32."""
    B, D, N = x.shape
    assert D == INPUT_DIM
    M = B * N

    # Balanced tiling: per-tile padding < 128 points (not a full tile), and the
    # grid stays >= min_tiles so v7x's two TensorCores both get work.
    m128 = _round_up(max(M, 128), 128)
    n_tiles = max(_cdiv(M, tm), min_tiles)
    n_tiles = max(min(n_tiles, m128 // 128), 1)
    tm_eff = _round_up(_cdiv(m128, n_tiles), 128)
    M_pad = n_tiles * tm_eff

    # Glue: points on lanes.  x_t[d, b*N + n] = x[b, d, n]
    x_t = jnp.transpose(x, (1, 0, 2)).reshape(D, M).astype(jnp.float32)
    x_p = x_t if M_pad == M else \
        jnp.zeros((D, M_pad), jnp.float32).at[:, :M].set(x_t)

    w1t, b1c, wh, bh, w5c, b5c = packed_params
    mxu_itemsize = jnp.dtype(wh.dtype).itemsize

    if vmem_limit_bytes is None:
        vmem_limit_bytes = _default_vmem_limit_bytes(tm_eff, act_dtype)

    flops_per_pt = (2 * INPUT_DIM * HIDDEN_DIM
                    + (DEPTH - 1) * 2 * HIDDEN_DIM * HIDDEN_DIM
                    + 2 * HIDDEN_DIM * OUTPUT_DIM)
    cost = pl.CostEstimate(
        flops=int(flops_per_pt * M_pad),
        transcendentals=int(DEPTH * HIDDEN_DIM * M_pad),
        bytes_accessed=int(
            4 * (INPUT_DIM + OUTPUT_DIM) * M_pad
            + (DEPTH - 1) * HIDDEN_DIM * HIDDEN_DIM * mxu_itemsize
            + 4 * HIDDEN_DIM * (INPUT_DIM + OUTPUT_DIM)
            + 4 * (DEPTH * HIDDEN_DIM + OUTPUT_DIM)),
    )

    kernel = functools.partial(pinn_kernel, act_dtype=act_dtype)

    out_p = pl.pallas_call(
        kernel,
        out_shape=jax.ShapeDtypeStruct((OUTPUT_DIM, M_pad), jnp.float32),
        grid_spec=pltpu.PrefetchScalarGridSpec(
            num_scalar_prefetch=0,
            grid=(n_tiles,),
            in_specs=[
                pl.BlockSpec((INPUT_DIM, tm_eff), lambda i: (0, i)),       # x
                pl.BlockSpec((HIDDEN_DIM, INPUT_DIM), lambda i: (0, 0)),   # W1.T
                pl.BlockSpec((HIDDEN_DIM, 1), lambda i: (0, 0)),           # b1
                pl.BlockSpec((DEPTH - 1, HIDDEN_DIM, HIDDEN_DIM),
                             lambda i: (0, 0, 0)),                         # Wk.T
                pl.BlockSpec((DEPTH - 1, HIDDEN_DIM, 1),
                             lambda i: (0, 0, 0)),                         # bk
                pl.BlockSpec((HIDDEN_DIM, OUTPUT_DIM), lambda i: (0, 0)),  # W5
                pl.BlockSpec((OUTPUT_DIM, 1), lambda i: (0, 0)),           # b5
            ],
            out_specs=pl.BlockSpec((OUTPUT_DIM, tm_eff), lambda i: (0, i)),
        ),
        compiler_params=pltpu.CompilerParams(
            dimension_semantics=("parallel",),
            vmem_limit_bytes=vmem_limit_bytes),
        cost_estimate=cost,
    )(x_p, w1t, b1c, wh, bh, w5c, b5c)

    # Glue: un-pad and restore the PyTorch (B, OUTPUT_DIM, N) layout.
    out = out_p[:, :M]
    return jnp.transpose(out.reshape(OUTPUT_DIM, B, N), (1, 0, 2))


def init_params(key):
    """Deterministic init matching nn.Linear shapes (uniform +-1/sqrt(fan_in))."""
    dims = [(INPUT_DIM, HIDDEN_DIM)]
    dims += [(HIDDEN_DIM, HIDDEN_DIM)] * (DEPTH - 1)
    dims += [(HIDDEN_DIM, OUTPUT_DIM)]
    params = []
    for (fan_in, fan_out) in dims:
        key, kw, kb = jax.random.split(key, 3)
        bound = 1.0 / jnp.sqrt(float(fan_in))
        w = jax.random.uniform(kw, (fan_in, fan_out), jnp.float32, -bound, bound)
        b = jax.random.uniform(kb, (fan_out,), jnp.float32, -bound, bound)
        params.append((w, b))
    return params


def pinn_reference(x, params):
    """Plain-JAX (f32) reference of the PyTorch forward."""
    B, D, N = x.shape
    h = jnp.transpose(x, (0, 2, 1)).reshape(B * N, D)
    for (w, b) in params[:-1]:
        h = jnp.tanh(h @ w + b)
    w, b = params[-1]
    out = h @ w + b
    return jnp.transpose(out.reshape(B, N, OUTPUT_DIM), (0, 2, 1))


if __name__ == "__main__":
    key = jax.random.PRNGKey(0)
    kx, kp = jax.random.split(key)

    B, D, N = 2, INPUT_DIM, 256            # x: (B, input_dim, num_points)
    x = jax.random.normal(kx, (B, D, N), jnp.float32)
    params = init_params(kp)
    ref = pinn_reference(x, params)

    # 1) f32 path: structural correctness check (tolerance accounts for the
    #    backend's default f32-matmul precision on the MXU).
    packed_f32 = prepare_params(params, mxu_dtype=jnp.float32)
    out_f32 = jax.block_until_ready(
        pinn_forward(x, packed_f32, act_dtype=jnp.float32))
    assert out_f32.shape == (B, OUTPUT_DIM, N), out_f32.shape
    assert jnp.allclose(out_f32, ref, atol=3e-2, rtol=3e-2), float(
        jnp.max(jnp.abs(out_f32 - ref)))

    # 2) device-default perf path (bf16 MXU operands on v5x+, bf16 activations
    #    on v6e/v7x).  Loose tolerance — f32 accumulation is preserved.
    mxu_dtype, act_dtype = _default_dtypes()
    packed = prepare_params(params, mxu_dtype=mxu_dtype)
    out = jax.block_until_ready(pinn_forward(x, packed, act_dtype=act_dtype))
    assert out.shape == (B, OUTPUT_DIM, N), out.shape
    tol = 3e-2 if (mxu_dtype == jnp.float32 and act_dtype == jnp.float32) \
        else 1.5e-1
    assert jnp.allclose(out, ref, atol=tol, rtol=tol), float(
        jnp.max(jnp.abs(out - ref)))

    print("KERNEL_OK")
</pallas_src>

<mosaic_0001>
module attributes {stable_mosaic.version = 11 : i64} {
  func.func @pinn_kernel(%arg0: i32, %arg1: memref<2x256xf32, #tpu.memory_space<vmem>>, %arg2: memref<128x2xf32, #tpu.memory_space<vmem>>, %arg3: memref<128x1xf32, #tpu.memory_space<vmem>>, %arg4: memref<3x128x128xf32, #tpu.memory_space<vmem>>, %arg5: memref<3x128x1xf32, #tpu.memory_space<vmem>>, %arg6: memref<128x1xf32, #tpu.memory_space<vmem>>, %arg7: memref<1x1xf32, #tpu.memory_space<vmem>>, %arg8: memref<1x256xf32, #tpu.memory_space<vmem>>) attributes {dimension_semantics = [#tpu.dimension_semantics<parallel>], iteration_bounds = array<i64: 2>, scalar_prefetch = 0 : i64, scratch_operands = 0 : i64, tpu.core_type = #tpu.core_type<tc>, window_params = [{transform_indices = @transform_0, window_bounds = array<i64: 2, 256>}, {pipeline_mode = #tpu.pipeline_mode<synchronous>, transform_indices = @transform_1, window_bounds = array<i64: 128, 2>}, {pipeline_mode = #tpu.pipeline_mode<synchronous>, transform_indices = @transform_2, window_bounds = array<i64: 128, 1>}, {pipeline_mode = #tpu.pipeline_mode<synchronous>, transform_indices = @transform_3, window_bounds = array<i64: 3, 128, 128>}, {pipeline_mode = #tpu.pipeline_mode<synchronous>, transform_indices = @transform_4, window_bounds = array<i64: 3, 128, 1>}, {pipeline_mode = #tpu.pipeline_mode<synchronous>, transform_indices = @transform_5, window_bounds = array<i64: 128, 1>}, {pipeline_mode = #tpu.pipeline_mode<synchronous>, transform_indices = @transform_6, window_bounds = array<i64: 1, 1>}, {transform_indices = @transform_7, window_bounds = array<i64: 1, 256>}]} {
    %c0 = arith.constant 0 : index
    %c0_0 = arith.constant 0 : index
    %0 = vector.load %arg1[%c0, %c0_0] : memref<2x256xf32, #tpu.memory_space<vmem>>, vector<2x256xf32>
    %c0_1 = arith.constant 0 : index
    %c0_2 = arith.constant 0 : index
    %1 = vector.load %arg2[%c0_1, %c0_2] : memref<128x2xf32, #tpu.memory_space<vmem>>, vector<128x2xf32>
    %2 = vector.extract_strided_slice %1 {offsets = [0, 0], sizes = [128, 1], strides = [1, 1]} : vector<128x2xf32> to vector<128x1xf32>
    %3 = vector.extract_strided_slice %0 {offsets = [0, 0], sizes = [1, 256], strides = [1, 1]} : vector<2x256xf32> to vector<1x256xf32>
    %4 = vector.broadcast %2 : vector<128x1xf32> to vector<128x256xf32>
    %5 = vector.broadcast %3 : vector<1x256xf32> to vector<128x256xf32>
    %6 = arith.mulf %4, %5 : vector<128x256xf32>
    %7 = vector.extract_strided_slice %1 {offsets = [0, 1], sizes = [128, 1], strides = [1, 1]} : vector<128x2xf32> to vector<128x1xf32>
    %8 = vector.extract_strided_slice %0 {offsets = [1, 0], sizes = [1, 256], strides = [1, 1]} : vector<2x256xf32> to vector<1x256xf32>
    %9 = vector.broadcast %7 : vector<128x1xf32> to vector<128x256xf32>
    %10 = vector.broadcast %8 : vector<1x256xf32> to vector<128x256xf32>
    %11 = arith.mulf %9, %10 : vector<128x256xf32>
    %12 = arith.addf %6, %11 : vector<128x256xf32>
    %c0_3 = arith.constant 0 : index
    %c0_4 = arith.constant 0 : index
    %13 = vector.load %arg3[%c0_3, %c0_4] : memref<128x1xf32, #tpu.memory_space<vmem>>, vector<128x1xf32>
    %14 = vector.broadcast %13 : vector<128x1xf32> to vector<128x256xf32>
    %15 = arith.addf %12, %14 : vector<128x256xf32>
    %16 = math.tanh %15 : vector<128x256xf32>
    %c0_5 = arith.constant 0 : index
    %c0_6 = arith.constant 0 : index
    %c0_7 = arith.constant 0 : index
    %17 = vector.load %arg4[%c0_5, %c0_6, %c0_7] : memref<3x128x128xf32, #tpu.memory_space<vmem>>, vector<1x128x128xf32>
    %18 = vector.shape_cast %17 : vector<1x128x128xf32> to vector<128x128xf32>
    %cst = arith.constant dense<0.000000e+00> : vector<128x256xf32>
    %19 = tpu.matmul %18, %16, %cst {dimension_numbers = #tpu.dot_dimension_numbers<[1], [0], [0], [1], [0, 0, 1, 1], [], []>} : vector<128x128xf32>, vector<128x256xf32>, vector<128x256xf32> -> vector<128x256xf32>
    %c0_8 = arith.constant 0 : index
    %c0_9 = arith.constant 0 : index
    %c0_10 = arith.constant 0 : index
    %20 = vector.load %arg5[%c0_8, %c0_9, %c0_10] : memref<3x128x1xf32, #tpu.memory_space<vmem>>, vector<1x128x1xf32>
    %21 = vector.shape_cast %20 : vector<1x128x1xf32> to vector<128x1xf32>
    %22 = vector.broadcast %21 : vector<128x1xf32> to vector<128x256xf32>
    %23 = arith.addf %19, %22 : vector<128x256xf32>
    %24 = math.tanh %23 : vector<128x256xf32>
    %c1 = arith.constant 1 : index
    %c0_11 = arith.constant 0 : index
    %c0_12 = arith.constant 0 : index
    %25 = vector.load %arg4[%c1, %c0_11, %c0_12] : memref<3x128x128xf32, #tpu.memory_space<vmem>>, vector<1x128x128xf32>
    %26 = vector.shape_cast %25 : vector<1x128x128xf32> to vector<128x128xf32>
    %cst_13 = arith.constant dense<0.000000e+00> : vector<128x256xf32>
    %27 = tpu.matmul %26, %24, %cst_13 {dimension_numbers = #tpu.dot_dimension_numbers<[1], [0], [0], [1], [0, 0, 1, 1], [], []>} : vector<128x128xf32>, vector<128x256xf32>, vector<128x256xf32> -> vector<128x256xf32>
    %c1_14 = arith.constant 1 : index
    %c0_15 = arith.constant 0 : index
    %c0_16 = arith.constant 0 : index
    %28 = vector.load %arg5[%c1_14, %c0_15, %c0_16] : memref<3x128x1xf32, #tpu.memory_space<vmem>>, vector<1x128x1xf32>
    %29 = vector.shape_cast %28 : vector<1x128x1xf32> to vector<128x1xf32>
    %30 = vector.broadcast %29 : vector<128x1xf32> to vector<128x256xf32>
    %31 = arith.addf %27, %30 : vector<128x256xf32>
    %32 = math.tanh %31 : vector<128x256xf32>
    %c2 = arith.constant 2 : index
    %c0_17 = arith.constant 0 : index
    %c0_18 = arith.constant 0 : index
    %33 = vector.load %arg4[%c2, %c0_17, %c0_18] : memref<3x128x128xf32, #tpu.memory_space<vmem>>, vector<1x128x128xf32>
    %34 = vector.shape_cast %33 : vector<1x128x128xf32> to vector<128x128xf32>
    %cst_19 = arith.constant dense<0.000000e+00> : vector<128x256xf32>
    %35 = tpu.matmul %34, %32, %cst_19 {dimension_numbers = #tpu.dot_dimension_numbers<[1], [0], [0], [1], [0, 0, 1, 1], [], []>} : vector<128x128xf32>, vector<128x256xf32>, vector<128x256xf32> -> vector<128x256xf32>
    %c2_20 = arith.constant 2 : index
    %c0_21 = arith.constant 0 : index
    %c0_22 = arith.constant 0 : index
    %36 = vector.load %arg5[%c2_20, %c0_21, %c0_22] : memref<3x128x1xf32, #tpu.memory_space<vmem>>, vector<1x128x1xf32>
    %37 = vector.shape_cast %36 : vector<1x128x1xf32> to vector<128x1xf32>
    %38 = vector.broadcast %37 : vector<128x1xf32> to vector<128x256xf32>
    %39 = arith.addf %35, %38 : vector<128x256xf32>
    %40 = math.tanh %39 : vector<128x256xf32>
    %c0_23 = arith.constant 0 : index
    %c0_24 = arith.constant 0 : index
    %41 = vector.load %arg6[%c0_23, %c0_24] : memref<128x1xf32, #tpu.memory_space<vmem>>, vector<128x1xf32>
    %42 = vector.broadcast %41 : vector<128x1xf32> to vector<128x256xf32>
    %43 = arith.mulf %42, %40 : vector<128x256xf32>
    %cst_25 = arith.constant dense<0.000000e+00> : vector<256xf32>
    %44 = vector.multi_reduction <add>, %43, %cst_25 [0] : vector<128x256xf32> to vector<256xf32>
    %45 = vector.shape_cast %44 : vector<256xf32> to vector<1x256xf32>
    %c0_26 = arith.constant 0 : index
    %c0_27 = arith.constant 0 : index
    %46 = vector.load %arg7[%c0_26, %c0_27] : memref<1x1xf32, #tpu.memory_space<vmem>>, vector<1x1xf32>
    %47 = vector.broadcast %46 : vector<1x1xf32> to vector<1x256xf32>
    %48 = arith.addf %45, %47 : vector<1x256xf32>
    %c0_28 = arith.constant 0 : index
    %c0_29 = arith.constant 0 : index
    %49 = vector.load %arg8[%c0_28, %c0_29] : memref<1x256xf32, #tpu.memory_space<vmem>>, vector<1x256xf32>
    tpu.vector_store %arg8[%c0_28, %c0_29], %48 {strides = array<i32>} : memref<1x256xf32, #tpu.memory_space<vmem>>, vector<1x256xf32>,
    return
  }
  func.func @transform_0(%arg0: i32) -> (i32, i32) {
    %c0_i32 = arith.constant 0 : i32
    %c0_i32_0 = arith.constant 0 : i32
    return %c0_i32, %arg0 : i32, i32
  }
  func.func @transform_1(%arg0: i32) -> (i32, i32) {
    %c0_i32 = arith.constant 0 : i32
    %c0_i32_0 = arith.constant 0 : i32
    %c0_i32_1 = arith.constant 0 : i32
    return %c0_i32, %c0_i32_0 : i32, i32
  }
  func.func @transform_2(%arg0: i32) -> (i32, i32) {
    %c0_i32 = arith.constant 0 : i32
    %c0_i32_0 = arith.constant 0 : i32
    %c0_i32_1 = arith.constant 0 : i32
    return %c0_i32, %c0_i32_0 : i32, i32
  }
  func.func @transform_3(%arg0: i32) -> (i32, i32, i32) {
    %c0_i32 = arith.constant 0 : i32
    %c0_i32_0 = arith.constant 0 : i32
    %c0_i32_1 = arith.constant 0 : i32
    %c0_i32_2 = arith.constant 0 : i32
    return %c0_i32, %c0_i32_0, %c0_i32_1 : i32, i32, i32
  }
  func.func @transform_4(%arg0: i32) -> (i32, i32, i32) {
    %c0_i32 = arith.constant 0 : i32
    %c0_i32_0 = arith.constant 0 : i32
    %c0_i32_1 = arith.constant 0 : i32
    %c0_i32_2 = arith.constant 0 : i32
    return %c0_i32, %c0_i32_0, %c0_i32_1 : i32, i32, i32
  }
  func.func @transform_5(%arg0: i32) -> (i32, i32) {
    %c0_i32 = arith.constant 0 : i32
    %c0_i32_0 = arith.constant 0 : i32
    %c0_i32_1 = arith.constant 0 : i32
    return %c0_i32, %c0_i32_0 : i32, i32
  }
  func.func @transform_6(%arg0: i32) -> (i32, i32) {
    %c0_i32 = arith.constant 0 : i32
    %c0_i32_0 = arith.constant 0 : i32
    %c0_i32_1 = arith.constant 0 : i32
    return %c0_i32, %c0_i32_0 : i32, i32
  }
  func.func @transform_7(%arg0: i32) -> (i32, i32) {
    %c0_i32 = arith.constant 0 : i32
    %c0_i32_0 = arith.constant 0 : i32
    return %c0_i32, %arg0 : i32, i32
  }
}

</mosaic_0001>

<bundles_post_ra>
// kernel: pinn_forward.1
= control target key start
LH: loop header
LB: loop body
LE: loop exit
PB: predicated region body
PF: predicated region fallthrough
CT: control target
= control target key end

     0   :  { %s3384_s0 = inlined_call_operand.vmem [shape: f32[2,512], index: 0, kind: input, shape index: {}]   ;;  %s3385_s1 = inlined_call_operand.vmem [shape: f32[128,2], index: 1, kind: input, shape index: {}]   ;;  %s3386_s2 = inlined_call_operand.vmem [shape: f32[128,1], index: 2, kind: input, shape index: {}]   ;;  %s3387_s3 = inlined_call_operand.vmem [shape: f32[3,128,128], index: 3, kind: input, shape index: {}]   ;;  %s3388_s4 = inlined_call_operand.vmem [shape: f32[3,128,1], index: 4, kind: input, shape index: {}]   ;;  %s3389_s5 = inlined_call_operand.vmem [shape: f32[128,1], index: 5, kind: input, shape index: {}]   ;;  %s3390_s6 = inlined_call_operand.<no memory space> [shape: f32[1,1], index: 6, kind: input, shape index: {}]   ;;  %s3391_s7 = inlined_call_operand.hbm [shape: f32[1,512], index: 7, kind: output, shape index: {}]  }
   0x1   :  { %v12_v0 = vstv %s3390_s6 }
   0x2   :  { %13 = vst [vmem:[#allocation2] sm:$0x1] %v12_v0 }
   0x3   :  { %14 = vsyncpa [#allocation4], 0 }
   0x4   :  { %16 = vsyncpa [#allocation4 + $0x1], 0  ;;  %s2552_s26 = smov 0   ;;  %s2554_s27 = smov 0  }
   0x5   :  { %s2556_s28 = smov 0   ;;  %s2558_s29 = smov 0  }
   0x6 LB: > { %s2573_s6 = sadd.s32 4294967295, %s2502_s29   ;;  %s1934_s30 = sadd.s32 4294967294, %s2502_s29   ;;  %s2502_s29 = sphi %s2558_s29, %s3397_s29   ;;  %s2498_s28 = sphi %s2556_s28, %s3396_s28   ;;  %s2494_s27 = sphi %s2554_s27, %s3395_s27   ;;  %s2490_s26 = sphi %s2552_s26, %s3394_s26  }
   0x7   : > { %s2577_s8 = sadd.s32 1, %s2502_s29   ;;  %s181_s9 = sadd.s32 1, %s2498_s28 }
   0x8   : > { %s178_s10 = ssub.s32 %s2502_s29, %s2577_s8  ;;  %p191_p0 = scmp.ne.s32.totalorder %s2498_s28, %s2494_s27 }
   0x9   : > { %p179_p1 = scmp.eq.s32.totalorder %s178_s10, 0  ;;  %p192_p2 = scmp.eq.s32.totalorder %s2573_s6, 1 }
   0xa   : > { %p197_p3 = scmp.ne.s32.totalorder %s2494_s27, %s2490_s26  ;;  %p198_p4 = scmp.eq.s32.totalorder %s1934_s30, 1 }
   0xb   : > { %s2588_s11 = scalar_select %p179_p1, %s2498_s28, %s181_s9  }
   0xc   : > { %p2590_p5 = por %p192_p2, %p191_p0  ;;  %p2594_p6 = por %p198_p4, %p197_p3 }
   0xd   : > { %p1937_p7 = scmp.ge.s32.totalorder %s2502_s29, 1  ;;  %p243_p8 = scmp.lt.s32.totalorder %s2502_s29, 3 }
   0xf   : > { %p244_p9 = pnand %p1937_p7, %p243_p8 }
  0x10   : > { %v285_v1 = vld [vmem:[%s3385_s1 + $0x10] sm:$0xff] (!%p244_p9)  ;;  %v283_v2 = vld [vmem:[%s3385_s1] sm:$0xff] (!%p244_p9)  ;;  %v2504_v3 = vmov (!%p244_p9), 1   ;;  %v284_v5 = vld [vmem:[%s3385_s1 + $0x8] sm:$0xff] (!%p244_p9)  ;;  %v2505_v8 = vmov (!%p244_p9), 0   ;;  %s1939_s20 = sshll.u32 (!%p244_p9), %s2573_s6, 1  ;;  %v380_v62 = vlaneseq (!%p244_p9) }
  0x11   : > { %247 = sbr.rel (%p244_p9) target bundleno = 1195 (0x4ab), region = 48  ;;  %2168 = vset.pattern.permute.xlu0 (!%p244_p9), %v2504_v3  ;;  %2166 = vset.pattern.permute.xlu1 (!%p244_p9), %v2504_v3  ;;  %v287_v4 = vld [vmem:[%s3385_s1 + $0x20] sm:$0xff] (!%p244_p9)  ;;  %v289_v6 = vld [vmem:[%s3385_s1 + $0x30] sm:$0xff] (!%p244_p9)  ;;  %v286_v7 = vld [vmem:[%s3385_s1 + $0x18] sm:$0xff] (!%p244_p9)  ;;  %p276_p10 = scmp.lt.s32.totalorder (!%p244_p9), %s1939_s20, 3 }
  0x12   : > { %439 = vperm.xlu0 (!%p244_p9), %2168, %v285_v1   ;;  %431 = vperm.xlu1 (!%p244_p9), %2166, %v283_v2   ;;  %v291_v9 = vld [vmem:[%s3385_s1 + $0x40] sm:$0xff] (!%p244_p9)  ;;  %v293_v10 = vld [vmem:[%s3385_s1 + $0x50] sm:$0xff] (!%p244_p9)  ;;  %v288_v14 = vld [vmem:[%s3385_s1 + $0x28] sm:$0xff] (!%p244_p9)  ;;  %s272_s23 = sand.u32 (!%p244_p9), 1, %s2494_s27   ;;  %s2010_s25 = sshll.u32 (!%p244_p9), %s2573_s6, 5  ;;  %vm1857_vm0 = vcmp.lt.s32.totalorder (!%p244_p9), %v380_v62, 256 }
  0x13   : > { %v576_v11 = vld [vmem:[%s3386_s2] sm:$0xff] (!%p244_p9)  ;;  %v2641_v13 = vld [vmem:[%s3385_s1 + $0x70] sm:$0xff] (!%p244_p9)  ;;  %v577_v16 = vld [vmem:[%s3386_s2 + $0x8] sm:$0xff] (!%p244_p9)  ;;  %s3342_s14 = scalar_lea.hbm (!%p244_p9), %s3391_s7, %s2010_s25  ;;  %s1861_s15 = scalar_lea.sflag (!%p244_p9), [#allocation4], %s272_s23 }
  0x14   : > { %v2634_v12 = vld [vmem:[%s3385_s1 + $0x60] sm:$0xff] (!%p244_p9)  ;;  %v578_v15 = vld [vmem:[%s3386_s2 + $0x10] sm:$0xff] (!%p244_p9)  ;;  %v579_v17 = vld [vmem:[%s3386_s2 + $0x18] sm:$0xff] (!%p244_p9)  ;;  %s2508_s6 = smov (!%p244_p9), [#allocation3]  }
  0x15   : > { %v290_v18 = vld [vmem:[%s3385_s1 + $0x38] sm:$0xff] (!%p244_p9)  ;;  %v581_v19 = vld [vmem:[%s3386_s2 + $0x28] sm:$0xff] (!%p244_p9)  ;;  %v580_v21 = vld [vmem:[%s3386_s2 + $0x20] sm:$0xff] (!%p244_p9)  ;;  %s2444_s17 = sshll.u32 (!%p244_p9), %s2508_s6, 4  ;;  %s2445_s17 = int_to_ptr.vmem [resolvable:$false] %s2444_s17 }
  0x16   : > { %447 = vperm.xlu0 (!%p244_p9), %2168, %v287_v4   ;;  %435 = vperm.xlu1 (!%p244_p9), %2166, %v284_v5   ;;  %v583_v20 = vld [vmem:[%s3386_s2 + $0x38] sm:$0xff] (!%p244_p9)  ;;  %v585_v22 = vld [vmem:[%s3386_s2 + $0x48] sm:$0xff] (!%p244_p9)  ;;  %v752_v26 = vld [vmem:[%s3388_s4] sm:$0xff] (!%p244_p9) }
  0x17   : > { %v587_v23 = vld [vmem:[%s3386_s2 + $0x58] sm:$0xff] (!%p244_p9)  ;;  %v292_v24 = vld [vmem:[%s3385_s1 + $0x48] sm:$0xff] (!%p244_p9)  ;;  %v754_v27 = vld [vmem:[%s3388_s4 + $0x10] sm:$0xff] (!%p244_p9) }
  0x18   : > { %v589_v25 = vld [vmem:[%s3386_s2 + $0x68] sm:$0xff]  ;;  %v582_v28 = vld [vmem:[%s3386_s2 + $0x30] sm:$0xff]  ;;  %v756_v29 = vld [vmem:[%s3388_s4 + $0x20] sm:$0xff]  ;;  %s3399_s20 = smov (!%p276_p10, %s1939_s20), 3 }
  0x19   : > { %v758_v30 = vld [vmem:[%s3388_s4 + $0x30] sm:$0xff]  ;;  %v294_v31 = vld [vmem:[%s3385_s1 + $0x58] sm:$0xff]  ;;  %v760_v32 = vld [vmem:[%s3388_s4 + $0x40] sm:$0xff]  ;;  %s1940_s18 = sshll.u32 %s3399_s20, 1 }
  0x1a   : > { %455 = vperm.xlu0 %2168, %v289_v6   ;;  %2167 = vset.pattern.permute.xlu1 %v2505_v8  ;;  %v762_v33 = vld [vmem:[%s3388_s4 + $0x50] sm:$0xff]  ;;  %v584_v34 = vld [vmem:[%s3386_s2 + $0x40] sm:$0xff]  ;;  %v296_v37 = vld [vmem:[%s3385_s1 + $0x68] sm:$0xff]  ;;  %s279_s24 = scalar_lea.vmem %s3384_s0, %s1940_s18  ;;  %s2446_s18 = scalar_lea.vmem %s2445_s17, 64 }
  0x1b   : > { %316 = vperm.xlu1 %2167, %v286_v7   ;;  %v764_v35 = vld [vmem:[%s3388_s4 + $0x60] sm:$0xff]  ;;  %v766_v36 = vld [vmem:[%s3388_s4 + $0x70] sm:$0xff]  ;;  %v298_v44 = vld [vmem:[%s3385_s1 + $0x78] sm:$0xff] }
  0x1c   : > { %v1957_v38 = vld [vmem:[%s3388_s4 + $0x80] sm:$0xff]  ;;  %v1959_v39 = vld [vmem:[%s3388_s4 + $0x90] sm:$0xff]  ;;  %v591_v55 = vld [vmem:[%s3386_s2 + $0x78] sm:$0xff] }
  0x1d   : > { %v1961_v40 = vld [vmem:[%s3388_s4 + $0xa0] sm:$0xff]  ;;  %v586_v41 = vld [vmem:[%s3386_s2 + $0x50] sm:$0xff]  ;;  %v753_v59 = vld [vmem:[%s3388_s4 + $0x8] sm:$0xff] }
  0x1e   : > { %463 = vperm.xlu0 %2168, %v291_v9   ;;  %v1963_v42 = vld [vmem:[%s3388_s4 + $0xb0] sm:$0xff]  ;;  %v1965_v43 = vld [vmem:[%s3388_s4 + $0xc0] sm:$0xff]  ;;  %v755_v63 = vld [vmem:[%s3388_s4 + $0x18] sm:$0xff] }
  0x1f   : > { %2169 = vset.pattern.permute.xlu1 %v2504_v3  ;;  %v1967_v45 = vld [vmem:[%s3388_s4 + $0xd0] sm:$0xff]  ;;  %v1969_v46 = vld [vmem:[%s3388_s4 + $0xe0] sm:$0xff] }
  0x20   : > { %443 = vperm.xlu1 %2169, %v286_v7   ;;  %v588_v47 = vld [vmem:[%s3386_s2 + $0x60] sm:$0xff]  ;;  %v1971_v48 = vld [vmem:[%s3388_s4 + $0xf0] sm:$0xff] }
  0x21   : > { %v590_v51 = vld [vmem:[%s3386_s2 + $0x70] sm:$0xff]  ;;  %v1989_v52 = vld [vmem:[%s3388_s4 + $0x100] sm:$0xff] }
  0x22   : > { %471 = vperm.xlu0 %2168, %v293_v10   ;;  %v1991_v56 = vld [vmem:[%s3388_s4 + $0x110] sm:$0xff]  ;;  %v1993_v60 = vld [vmem:[%s3388_s4 + $0x120] sm:$0xff] }
  0x24   : > { %2170 = vset.pattern.permute.xlu1 %v2505_v8 }
  0x25   : > { %594 = vperm.xlu1 %2170, %v576_v11  }
  0x26   : > { %479 = vperm.xlu0 %2168, %v2634_v12  }
  0x29   : > { %321 = vperm.xlu1 %2170, %v287_v4   ;;  %v757_v4 = vld [vmem:[%s3388_s4 + $0x28] sm:$0xff] }
  0x2a   : > { %487 = vperm.xlu0 %2168, %v2641_v13  }
  0x2d   : > { %326 = vperm.xlu1 %2170, %v288_v14  }
  0x2e   : > { %2181 = vset.pattern.permute.xlu0 %v2505_v8 }
  0x2f   : > { %301 = vperm.xlu0 %2181, %v283_v2  }
  0x31   : > { %2171 = vset.pattern.permute.xlu1 %v2504_v3 }
  0x32   : > { %451 = vperm.xlu1 %2171, %v288_v14  }
  0x33   : > { %306 = vperm.xlu0 %2181, %v284_v5  }
  0x36   : > { %2172 = vset.pattern.permute.xlu1 %v2505_v8 }
  0x37   : > { %311 = vperm.xlu0 %2181, %v285_v1   ;;  %604 = vperm.xlu1 %2172, %v578_v15   ;;  %v1995_v1 = vld [vmem:[%s3388_s4 + $0x130] sm:$0xff]  ;;  %v1997_v15 = vld [vmem:[%s3388_s4 + $0x140] sm:$0xff] }
  0x3b   : > { %599 = vperm.xlu0 %2181, %v577_v16   ;;  %331 = vperm.xlu1 %2172, %v289_v6   ;;  %v1655_v6 = vld [vmem:[%s3389_s5] sm:$0xff] }
  0x3f   : > { %609 = vperm.xlu0 %2181, %v579_v17   ;;  %336 = vperm.xlu1 %2172, %v290_v18  }
  0x43   : > { %619 = vperm.xlu0 %2181, %v581_v19   ;;  %2173 = vset.pattern.permute.xlu1 %v2504_v3  ;;  %v761_v19 = vld [vmem:[%s3388_s4 + $0x48] sm:$0xff] }
  0x44   : > { %459 = vperm.xlu1 %2173, %v290_v18  }
  0x47   : > { %629 = vperm.xlu0 %2181, %v583_v20  }
  0x48   : > { %2174 = vset.pattern.permute.xlu1 %v2505_v8 }
  0x49   : > { %614 = vperm.xlu1 %2174, %v580_v21  }
  0x4b   : > { %639 = vperm.xlu0 %2181, %v585_v22   ;;  %v2506_v22 = vmov 0.0  }
  0x4c   : > { %912 = vmatprep.mubr.f32.mxu0 %v2506_v22  ;;  %960 = vmatprep.mubr.f32.mxu1 %v2506_v22 }
  0x4d   : > { %341 = vperm.xlu1 %2174, %v291_v9  }
  0x4f   : > { %649 = vperm.xlu0 %2181, %v587_v23  }
  0x51   : > { %346 = vperm.xlu1 %2174, %v292_v24  }
  0x53   : > { %659 = vperm.xlu0 %2181, %v589_v25  }
  0x55   : > { %2175 = vset.pattern.permute.xlu1 %v2504_v3 }
  0x56   : > { %467 = vperm.xlu1 %2175, %v292_v24   ;;  %v1998_v24 = vld [vmem:[%s3388_s4 + $0x148] sm:$0xff] }
  0x57   : > { %770 = vperm.xlu0 %2181, %v752_v26  }
  0x5a   : > { %2176 = vset.pattern.permute.xlu1 %v2505_v8 }
  0x5b   : > { %780 = vperm.xlu0 %2181, %v754_v27   ;;  %624 = vperm.xlu1 %2176, %v582_v28   ;;  %v763_v28 = vld [vmem:[%s3388_s4 + $0x58] sm:$0xff] }
  0x5f   : > { %790 = vperm.xlu0 %2181, %v756_v29   ;;  %351 = vperm.xlu1 %2176, %v293_v10   ;;  %v759_v10 = vld [vmem:[%s3388_s4 + $0x38] sm:$0xff] }
  0x63   : > { %800 = vperm.xlu0 %2181, %v758_v30   ;;  %356 = vperm.xlu1 %2176, %v294_v31  }
  0x67   : > { %810 = vperm.xlu0 %2181, %v760_v32   ;;  %2177 = vset.pattern.permute.xlu1 %v2504_v3  ;;  %v1999_v32 = vld [vmem:[%s3388_s4 + $0x150] sm:$0xff] }
  0x68   : > { %475 = vperm.xlu1 %2177, %v294_v31  }
  0x6b   : > { %820 = vperm.xlu0 %2181, %v762_v33  }
  0x6c   : > { %2178 = vset.pattern.permute.xlu1 %v2505_v8 }
  0x6d   : > { %634 = vperm.xlu1 %2178, %v584_v34  }
  0x6f   : > { %830 = vperm.xlu0 %2181, %v764_v35  }
  0x71   : > { %361 = vperm.xlu1 %2178, %v2634_v12   ;;  %v282_v12 = vld [vmem:[%s279_s24] sm:$0xf]  ;;  %s1938_s24 = sshll.u32 %s272_s23, 1 }
  0x72   : > { %s274_s30 = scalar_lea.vmem [#allocation3], %s1938_s24 }
  0x73   : > { %840 = vperm.xlu0 %2181, %v766_v36   ;;  %s1875_s20 = sshll.u32 %s274_s30, 4  ;;  %s3344_s20 = int_to_ptr.vmem [resolvable:$true] %s1875_s20 }
  0x74   : > { %s2440_s16 = scalar_lea.vmem %s3344_s20, 32  ;;  %p2447_p0 = scmp.lt.s32.totalorder %s3344_s20, %s2445_s17 }
  0x75   : > { %366 = vperm.xlu1 %2178, %v296_v37   ;;  %p2441_p11 = scmp.ne.s32.totalorder %s3344_s20, %s2440_s16  ;;  %p2448_p1 = scmp.lt.s32.totalorder %s2446_s18, %s2440_s16 }
  0x77   : > { %1077 = vperm.xlu0 %2181, %v1957_v38   ;;  %p2442_p12 = pnand %p2441_p11, %p2590_p5  ;;  %p2449_p2 = por %p2448_p1, %p2447_p0 }
  0x79   : > { %2179 = vset.pattern.permute.xlu1 %v2504_v3  ;;  %p2443_p13 = pneg %p2442_p12 }
  0x7a   : > { %483 = vperm.xlu1 %2179, %v296_v37   ;;  %v765_v37 = vld [vmem:[%s3388_s4 + $0x68] sm:$0xff] }
  0x7b   : > { %1087 = vperm.xlu0 %2181, %v1959_v39   ;;  %p2450_p3 = pnand %p2449_p2, %p2443_p13 }
  0x7e   : > { %2180 = vset.pattern.permute.xlu1 %v2505_v8 }
  0x7f   : > { %1097 = vperm.xlu0 %2181, %v1961_v40   ;;  %644 = vperm.xlu1 %2180, %v586_v41   ;;  %v2000_v40 = vld [vmem:[%s3388_s4 + $0x158] sm:$0xff] }
  0x83   : > { %1107 = vperm.xlu0 %2181, %v1963_v42   ;;  %371 = vperm.xlu1 %2180, %v2641_v13  }
  0x87   : > { %1117 = vperm.xlu0 %2181, %v1965_v43   ;;  %376 = vperm.xlu1 %2180, %v298_v44  }
  0x8b   : > { %1127 = vperm.xlu0 %2181, %v1967_v45   ;;  %2182 = vset.pattern.permute.xlu1 %v2504_v3  ;;  %v2808_v3 = vshrl.u32 %v380_v62, 7 }
  0x8c   : > { %491 = vperm.xlu1 %2182, %v298_v44  }
  0x8d   : > { %v2825_v9 = vsub.s32 0, %v2808_v3  ;;  %v500_v11 = vsub.s32 3, %v2808_v3  ;;  %v386_v13 = vsub.s32 2, %v2808_v3 }
  0x8f   : > { %1137 = vperm.xlu0 %2181, %v1969_v46   ;;  %v383_v18 = vrot.slane %v282_v12, %v2825_v9  ;;  %v501_v20 = vrot.slane %v282_v12, %v500_v11  ;;  %v387_v21 = vrot.slane %v282_v12, %v386_v13  ;;  %v1958_v11 = vld [vmem:[%s3388_s4 + $0x88] sm:$0xff] }
  0x90   : > { %2183 = vset.pattern.permute.xlu1 %v2505_v8  ;;  %v496_v8 = vsub.s32 1, %v2808_v3 }
  0x91   : > { %654 = vperm.xlu1 %2183, %v588_v47   ;;  %v2764_v49 = vpop.permute.xlu1 %431  ;;  %v2766_v50 = vpop.permute.xlu0 %439  ;;  %v2853_v26 = vrot.slane %v383_v18, %v2825_v9  ;;  %v2861_v30 = vrot.slane %v387_v21, %v2825_v9  ;;  %v767_v47 = vld [vmem:[%s3388_s4 + $0x78] sm:$0xff] }
  0x92   : > { %v497_v17 = vrot.slane %v282_v12, %v496_v8  ;;  %v2858_v29 = vrot.slane %v501_v20, %v496_v8 }
  0x93   : > { %1147 = vperm.xlu0 %2181, %v1971_v48  }
  0x94   : > { %v2850_v25 = vrot.slane %v497_v17, %v496_v8  ;;  %v513_v38 = vmul.f32 %v2858_v29, %v2764_v49  ;;  %v517_v41 = vmul.f32 %v2858_v29, %v2766_v50  ;;  %v2002_v17 = vld [vmem:[%s3388_s4 + $0x168] sm:$0xff] }
  0x95   : > { %664 = vperm.xlu1 %2183, %v590_v51   ;;  %v2774_v53 = vpop.permute.xlu1 %435  ;;  %v2776_v54 = vpop.permute.xlu0 %447 }
  0x96   : > { %v512_v35 = vmul.f32 %v2850_v25, %v2764_v49  ;;  %v516_v48 = vmul.f32 %v2850_v25, %v2766_v50  ;;  %v514_v49 = vmul.f32 %v2850_v25, %v2774_v53  ;;  %v2001_v50 = vld [vmem:[%s3388_s4 + $0x160] sm:$0xff] }
  0x97   : > { %1384 = vperm.xlu0 %2181, %v1989_v52  }
  0x99   : > { %669 = vperm.xlu1 %2183, %v591_v55   ;;  %v2785_v57 = vpop.permute.xlu0 %455  ;;  %v515_v55 = vmul.f32 %v2858_v29, %v2774_v53 }
  0x9a   : > { %v2787_v58 = vpop.permute.xlu1 %316 }
  0x9b   : > { %1394 = vperm.xlu0 %2181, %v1991_v56   ;;  %v404_v53 = vmul.f32 %v2853_v26, %v2787_v58  ;;  %v405_v12 = vmul.f32 %v2861_v30, %v2787_v58  ;;  %v1960_v58 = vld [vmem:[%s3388_s4 + $0x98] sm:$0xff] }
  0x9d   : > { %775 = vperm.xlu1 %2183, %v753_v59   ;;  %v2795_v61 = vpop.permute.xlu0 %463 }
  0x9f   : > { %1404 = vperm.xlu0 %2181, %v1993_v60   ;;  %v2800_v0 = vpop.permute.xlu1 %443 }
  0xa0   : > { %v518_v56 = vmul.f32 %v2850_v25, %v2800_v0  ;;  %v519_v60 = vmul.f32 %v2858_v29, %v2800_v0 }
  0xa1   : > { %785 = vperm.xlu1 %2183, %v755_v63   ;;  %v2805_v2 = vpop.permute.xlu0 %471 }
  0xa2   : > { %v550_v18 = vadd.f32 %v518_v56, %v404_v53 }
  0xa3   : > { %1414 = vperm.xlu0 %2181, %v1995_v1  }
  0xa4   : > { %v2816_v5 = vpop.permute.xlu1 %594 }
  0xa5   : > { %795 = vperm.xlu1 %2183, %v757_v4   ;;  %v2821_v7 = vpop.permute.xlu0 %479 }
  0xa7   : > { %1673 = vperm.xlu0 %2181, %v1655_v6  }
  0xa8   : > { %v2832_v14 = vpop.permute.xlu1 %321 }
  0xa9   : > { %805 = vperm.xlu1 %2183, %v759_v10   ;;  %v2837_v16 = vpop.permute.xlu0 %487 }
  0xab   : > { %1424 = vperm.xlu0 %2181, %v1997_v15  }
  0xac   : > { %v2844_v23 = vpop.permute.xlu1 %326 }
  0xad   : > { %815 = vperm.xlu1 %2183, %v761_v19   ;;  %v551_v19 = vadd.f32 %v519_v60, %v405_v12 }
  0xae   : > { %v302_v27 = vpop.permute.xlu0 %301 }
  0xaf   : > { %1429 = vperm.xlu0 %2181, %v1998_v24   ;;  %v398_v31 = vmul.f32 %v2853_v26, %v302_v27  ;;  %v399_v33 = vmul.f32 %v2861_v30, %v302_v27 }
  0xb1   : > { %825 = vperm.xlu1 %2183, %v763_v28   ;;  %v452_v34 = vpop.permute.xlu1 %451  ;;  %v544_v39 = vadd.f32 %v512_v35, %v398_v31  ;;  %v545_v42 = vadd.f32 %v513_v38, %v399_v33  ;;  %v520_v35 = vmul.f32 %v2850_v25, %v2776_v54  ;;  %v1962_v38 = vld [vmem:[%s3388_s4 + $0xa8] sm:$0xff] }
  0xb2   : > { %v307_v36 = vpop.permute.xlu0 %306  ;;  %v522_v31 = vmul.f32 %v2850_v25, %v452_v34  ;;  %v523_v33 = vmul.f32 %v2858_v29, %v452_v34  ;;  %v407_v34 = vmul.f32 %v2861_v30, %v2832_v14 }
  0xb3   : > { %1434 = vperm.xlu0 %2181, %v1999_v32   ;;  %v400_v43 = vmul.f32 %v2853_v26, %v307_v36  ;;  %v401_v44 = vmul.f32 %v2861_v30, %v307_v36  ;;  %v672_v59 = vadd.f32 %v2816_v5, %v544_v39  ;;  %v673_v63 = vadd.f32 %v2816_v5, %v545_v42  ;;  %v2003_v32 = vld [vmem:[%s3388_s4 + $0x170] sm:$0xff] }
  0xb4   : > { %v521_v36 = vmul.f32 %v2858_v29, %v2776_v54  ;;  %v406_v39 = vmul.f32 %v2853_v26, %v2832_v14  ;;  %v1964_v14 = vld [vmem:[%s3388_s4 + $0xb8] sm:$0xff] }
  0xb5   : > { %835 = vperm.xlu1 %2183, %v765_v37   ;;  %v546_v4 = vadd.f32 %v514_v49, %v400_v43  ;;  %v547_v8 = vadd.f32 %v515_v55, %v401_v44  ;;  %2184 = vtanh.f32 %v672_v59  ;;  %v408_v37 = vmul.f32 %v2853_v26, %v2844_v23  ;;  %v2004_v43 = vld [vmem:[%s3388_s4 + $0x178] sm:$0xff]  ;;  %v1665_v55 = vld [vmem:[%s3389_s5 + $0x50] sm:$0xff] }
  0xb6   : > { %v312_v45 = vpop.permute.xlu0 %311  ;;  %v605_v46 = vpop.permute.xlu1 %604  ;;  %2186 = vtanh.f32 %v673_v63  ;;  %v553_v49 = vadd.f32 %v521_v36, %v407_v34 }
  0xb7   : > { %v402_v51 = vmul.f32 %v2853_v26, %v312_v45  ;;  %v403_v52 = vmul.f32 %v2861_v30, %v312_v45  ;;  %1439 = vperm.xlu0 %2181, %v2000_v40   ;;  %v409_v40 = vmul.f32 %v2861_v30, %v2844_v23  ;;  %v554_v42 = vadd.f32 %v522_v31, %v408_v37  ;;  %v1970_v31 = vld [vmem:[%s3388_s4 + $0xe8] sm:$0xff] }
  0xb8   : > { %v552_v23 = vadd.f32 %v520_v35, %v406_v39  ;;  %v1825_v39 = vld [vmem:[#allocation2] sm:$0x1] }
  0xb9   : > { %v549_v1 = vadd.f32 %v517_v41, %v403_v52  ;;  %845 = vperm.xlu1 %2183, %v767_v47   ;;  %v548_v0 = vadd.f32 %v516_v48, %v402_v51  ;;  %v555_v44 = vadd.f32 %v523_v33, %v409_v40  ;;  %v525_v33 = vmul.f32 %v2858_v29, %v2785_v57 }
  0xba   : > { %v600_v6 = vpop.permute.xlu0 %599  ;;  %v2904_v10 = vpop.permute.xlu1 %331 }
  0xbb   : > { %v677_v13 = vadd.f32 %v605_v46, %v549_v1  ;;  %v674_v5 = vadd.f32 %v600_v6, %v546_v4  ;;  %1444 = vperm.xlu0 %2181, %v2001_v50   ;;  %v675_v15 = vadd.f32 %v600_v6, %v547_v8  ;;  %v676_v24 = vadd.f32 %v605_v46, %v548_v0  ;;  %v1966_v8 = vld [vmem:[%s3388_s4 + $0xc8] sm:$0xff]  ;;  %v1667_v0 = vld [vmem:[%s3389_s5 + $0x60] sm:$0xff] }
  0xbc   : > { %v410_v35 = vmul.f32 %v2853_v26, %v2904_v10 }
  0xbd   : > { %1082 = vperm.xlu1 %2183, %v1958_v11   ;;  %2188 = vtanh.f32 %v677_v13 }
  0xbe   : > { %v610_v20 = vpop.permute.xlu0 %609  ;;  %v2914_v21 = vpop.permute.xlu1 %336  ;;  %2190 = vtanh.f32 %v674_v5 }
  0xbf   : > { %v678_v27 = vadd.f32 %v610_v20, %v550_v18  ;;  %v679_v28 = vadd.f32 %v610_v20, %v551_v19  ;;  %1449 = vperm.xlu0 %2181, %v2002_v17   ;;  %2192 = vtanh.f32 %v675_v15  ;;  %v2185_v45 = vpop.eup %2184  ;;  %v1968_v17 = vld [vmem:[%s3388_s4 + $0xd8] sm:$0xff]  ;;  %v1669_v19 = vld [vmem:[%s3389_s5 + $0x70] sm:$0xff]  ;;  %v412_v20 = vmul.f32 %v2853_v26, %v2914_v21 }
  0xc0   : > { %v2187_v47 = vpop.eup %2186 }
  0xc1   : > { %2194 = vtanh.f32 %v678_v27  ;;  %1092 = vperm.xlu1 %2183, %v1960_v58   ;;  %v413_v58 = vmul.f32 %v2861_v30, %v2914_v21  ;;  %v524_v27 = vmul.f32 %v2850_v25, %v2785_v57  ;;  %v411_v21 = vmul.f32 %v2861_v30, %v2904_v10  ;;  %v1972_v57 = vld [vmem:[%s3388_s4 + $0xf8] sm:$0xff] }
  0xc2   : > { %2196 = vtanh.f32 %v679_v28  ;;  %v620_v41 = vpop.permute.xlu0 %619 }
  0xc3   : > { %2198 = vtanh.f32 %v676_v24  ;;  %1454 = vperm.xlu0 %2181, %v2003_v32   ;;  %v460_v54 = vpop.permute.xlu1 %459  ;;  %v682_v46 = vadd.f32 %v620_v41, %v554_v42  ;;  %v683_v48 = vadd.f32 %v620_v41, %v555_v44  ;;  %v556_v44 = vadd.f32 %v524_v27, %v410_v35 }
  0xc4   : > { %v526_v5 = vmul.f32 %v2850_v25, %v460_v54  ;;  %v527_v18 = vmul.f32 %v2858_v29, %v460_v54 }
  0xc5   : > { %1102 = vperm.xlu1 %2183, %v1962_v38   ;;  %2200 = vtanh.f32 %v682_v46 }
  0xc6   : > { %2202 = vtanh.f32 %v683_v48  ;;  %v558_v28 = vadd.f32 %v526_v5, %v412_v20  ;;  %v630_v36 = vpop.permute.xlu0 %629  ;;  %v559_v37 = vadd.f32 %v527_v18, %v413_v58 }
  0xc7   : > { %1459 = vperm.xlu0 %2181, %v2004_v43   ;;  %v2189_v51 = vpop.eup %2188 }
  0xc8   : > { %v615_v52 = vpop.permute.xlu1 %614  ;;  %v2191_v56 = vpop.eup %2190  ;;  %v686_v54 = vadd.f32 %v630_v36, %v558_v28  ;;  %v687_v43 = vadd.f32 %v630_v36, %v559_v37 }
  0xc9   : > { %v680_v59 = vadd.f32 %v615_v52, %v552_v23  ;;  %v681_v50 = vadd.f32 %v615_v52, %v553_v49  ;;  %1112 = vperm.xlu1 %2183, %v1964_v14   ;;  %v2193_v60 = vpop.eup %2192  ;;  %v2013_v63 = vpack.c.bf16 %v2191_v56, %v2185_v45  ;;  %v557_v45 = vadd.f32 %v525_v33, %v411_v21  ;;  %v1992_v23 = vld [vmem:[%s3388_s4 + $0x118] sm:$0xff]  ;;  %v1994_v56 = vld [vmem:[%s3388_s4 + $0x128] sm:$0xff] }
  0xca   : > { %v2011_v4 = vpack.c.bf16 %v2193_v60, %v2187_v47  ;;  %v1990_v47 = vld [vmem:[%s3388_s4 + $0x108] sm:$0xff]  ;;  %v528_v60 = vmul.f32 %v2850_v25, %v2795_v61  ;;  %v1658_v21 = vld [vmem:[%s3389_s5 + $0x18] sm:$0xff] }
  0xcb   : > { %v2195_v1 = vpop.eup %2194  ;;  %1723 = vperm.xlu0 %2181, %v1665_v55   ;;  %2204 = vtanh.f32 %v680_v59 }
  0xcc   : > { %v2197_v53 = vpop.eup %2196  ;;  %v2948_v6 = vpop.permute.xlu1 %341  ;;  %2206 = vtanh.f32 %v681_v50  ;;  %2012 = vmatprep.subr.bf16.mxu0 %v2011_v4  ;;  %2107 = vmatprep.subr.bf16.mxu1 %v2011_v4  ;;  %v529_v4 = vmul.f32 %v2858_v29, %v2795_v61 }
  0xcd   : > { %v2199_v11 = vpop.eup %2198  ;;  %v2015_v12 = vpack.c.bf16 %v2197_v53, %v2189_v51  ;;  %2014 = vmatpush1.bf16.msra.mxu0 %v2013_v63  ;;  %2115 = vmatpush1.bf16.msra.mxu1 %v2013_v63  ;;  %2208 = vtanh.f32 %v686_v54  ;;  %v414_v53 = vmul.f32 %v2853_v26, %v2948_v6 }
  0xce   : > { %v2017_v13 = vpack.c.bf16 %v2195_v1, %v2199_v11  ;;  %1122 = vperm.xlu1 %2183, %v1966_v8   ;;  %2210 = vtanh.f32 %v687_v43  ;;  %v415_v8 = vmul.f32 %v2861_v30, %v2948_v6 }
  0xcf   : > { %2016 = vmatprep.subr.bf16.mxu0 %v2015_v12  ;;  %2108 = vmatprep.subr.bf16.mxu1 %v2015_v12  ;;  %v2201_v24 = vpop.eup %2200  ;;  %v560_v20 = vadd.f32 %v528_v60, %v414_v53 }
  0xd0   : > { %1733 = vperm.xlu0 %2181, %v1667_v0   ;;  %v347_v15 = vpop.permute.xlu1 %346  ;;  %v2203_v32 = vpop.eup %2202  ;;  %v561_v58 = vadd.f32 %v529_v4, %v415_v8 }
  0xd1   : > { %2018 = vmatpush1.bf16.msra.mxu0 %v2017_v13  ;;  %2116 = vmatpush1.bf16.msra.mxu1 %v2017_v13  ;;  %v416_v55 = vmul.f32 %v2853_v26, %v347_v15  ;;  %v417_v59 = vmul.f32 %v2861_v30, %v347_v15  ;;  %v1996_v13 = vld [vmem:[%s3388_s4 + $0x138] sm:$0xff]  ;;  %v640_v15 = vpop.permute.xlu0 %639 }
  0xd2   : > { %1132 = vperm.xlu1 %2183, %v1968_v17  }
  0xd4   : > { %1743 = vperm.xlu0 %2181, %v1669_v19  }
  0xd5   : > { %v468_v38 = vpop.permute.xlu1 %467  ;;  %v2205_v34 = vpop.eup %2204 }
  0xd6   : > { %v2207_v40 = vpop.eup %2206  ;;  %1142 = vperm.xlu1 %2183, %v1970_v31   ;;  %v2021_v41 = vpack.c.bf16 %v2201_v24, %v2205_v34  ;;  %v530_v49 = vmul.f32 %v2850_v25, %v468_v38  ;;  %v531_v52 = vmul.f32 %v2858_v29, %v468_v38  ;;  %v1656_v24 = vld [vmem:[%s3389_s5 + $0x8] sm:$0xff] }
  0xd7   : > { %v2019_v42 = vpack.c.bf16 %v2203_v32, %v2207_v40  ;;  %v2209_v50 = vpop.eup %2208  ;;  %v1657_v32 = vld [vmem:[%s3389_s5 + $0x10] sm:$0xff]  ;;  %v1659_v40 = vld [vmem:[%s3389_s5 + $0x20] sm:$0xff] }
  0xd8   : > { %1828 = vperm.xlu0 %2181, %v1825_v39   ;;  %v562_v63 = vadd.f32 %v530_v49, %v416_v55  ;;  %v2211_v1 = vpop.eup %2210  ;;  %v563_v11 = vadd.f32 %v531_v52, %v417_v59 }
  0xd9   : > { %2020 = vmatprep.subr.bf16.mxu0 %v2019_v42  ;;  %2109 = vmatprep.subr.bf16.mxu1 %v2019_v42 }
  0xda   : > { %v625_v10 = vpop.permute.xlu1 %624  ;;  %1152 = vperm.xlu1 %2183, %v1972_v57   ;;  %2022 = vmatpush1.bf16.msra.mxu0 %v2021_v41  ;;  %v690_v18 = vadd.f32 %v640_v15, %v562_v63  ;;  %v691_v61 = vadd.f32 %v640_v15, %v563_v11  ;;  %v1662_v63 = vld [vmem:[%s3389_s5 + $0x38] sm:$0xff] }
  0xdb   : > { %v684_v46 = vadd.f32 %v625_v10, %v556_v44  ;;  %v685_v14 = vadd.f32 %v625_v10, %v557_v45  ;;  %2117 = vmatpush1.bf16.msra.mxu1 %v2021_v41  ;;  %v532_v10 = vmul.f32 %v2850_v25, %v2805_v2 }
  0xdd   : > { %2212 = vtanh.f32 %v684_v46  ;;  %v533_v46 = vmul.f32 %v2858_v29, %v2805_v2  ;;  %v1661_v2 = vld [vmem:[%s3389_s5 + $0x30] sm:$0xff] }
  0xde   : > { %v352_v48 = vpop.permute.xlu1 %351  ;;  %2214 = vtanh.f32 %v685_v14  ;;  %1389 = vperm.xlu1 %2183, %v1990_v47   ;;  %v650_v14 = vpop.permute.xlu0 %649 }
  0xdf   : > { %2216 = vtanh.f32 %v690_v18  ;;  %v418_v54 = vmul.f32 %v2853_v26, %v352_v48  ;;  %v419_v42 = vmul.f32 %v2861_v30, %v352_v48 }
  0xe0   : > { %2218 = vtanh.f32 %v691_v61 }
  0xe1   : > { %v564_v52 = vadd.f32 %v532_v10, %v418_v54  ;;  %v565_v55 = vadd.f32 %v533_v46, %v419_v42 }
  0xe2   : > { %v357_v51 = vpop.permute.xlu1 %356  ;;  %1399 = vperm.xlu1 %2183, %v1992_v23  }
  0xe3   : > { %v420_v37 = vmul.f32 %v2853_v26, %v357_v51  ;;  %v421_v38 = vmul.f32 %v2861_v30, %v357_v51  ;;  %v1660_v51 = vld [vmem:[%s3389_s5 + $0x28] sm:$0xff] }
  0xe6   : > { %1409 = vperm.xlu1 %2183, %v1994_v56  }
  0xe7   : > { %v476_v12 = vpop.permute.xlu1 %475  ;;  %v2213_v0 = vpop.eup %2212 }
  0xe8   : > { %v2215_v5 = vpop.eup %2214  ;;  %v2025_v17 = vpack.c.bf16 %v2209_v50, %v2213_v0  ;;  %v534_v33 = vmul.f32 %v2850_v25, %v476_v12  ;;  %v535_v36 = vmul.f32 %v2858_v29, %v476_v12  ;;  %v1663_v12 = vld [vmem:[%s3389_s5 + $0x40] sm:$0xff] }
  0xe9   : > { %v2023_v19 = vpack.c.bf16 %v2211_v1, %v2215_v5  ;;  %v2217_v39 = vpop.eup %2216 }
  0xea   : > { %1419 = vperm.xlu1 %2183, %v1996_v13   ;;  %v566_v34 = vadd.f32 %v534_v33, %v420_v37  ;;  %v2219_v41 = vpop.eup %2218  ;;  %v567_v57 = vadd.f32 %v535_v36, %v421_v38 }
  0xeb   : > { %2024 = vmatprep.subr.bf16.mxu0 %v2023_v19  ;;  %2110 = vmatprep.subr.bf16.mxu1 %v2023_v19 }
  0xec   : > { %v635_v6 = vpop.permute.xlu1 %634  ;;  %2026 = vmatpush1.bf16.msra.mxu0 %v2025_v17  ;;  %2118 = vmatpush1.bf16.msra.mxu1 %v2025_v17  ;;  %v694_v23 = vadd.f32 %v650_v14, %v566_v34  ;;  %v695_v48 = vadd.f32 %v650_v14, %v567_v57 }
  0xed   : > { %v688_v27 = vadd.f32 %v635_v6, %v560_v20  ;;  %v689_v28 = vadd.f32 %v635_v6, %v561_v58  ;;  %v660_v20 = vpop.permute.xlu0 %659  ;;  %v1664_v58 = vld [vmem:[%s3389_s5 + $0x48] sm:$0xff] }
  0xee   : > { %1678 = vperm.xlu1 %2183, %v1656_v24   ;;  %v536_v24 = vmul.f32 %v2850_v25, %v2821_v7 }
  0xef   : > { %2220 = vtanh.f32 %v688_v27  ;;  %v537_v27 = vmul.f32 %v2858_v29, %v2821_v7  ;;  %v540_v7 = vmul.f32 %v2850_v25, %v2837_v16 }
  0xf0   : > { %v362_v31 = vpop.permute.xlu1 %361  ;;  %2222 = vtanh.f32 %v689_v28 }
  0xf1   : > { %2224 = vtanh.f32 %v694_v23  ;;  %v422_v17 = vmul.f32 %v2853_v26, %v362_v31  ;;  %v423_v18 = vmul.f32 %v2861_v30, %v362_v31  ;;  %v1670_v23 = vld [vmem:[%s3389_s5 + $0x78] sm:$0xff] }
  0xf2   : > { %1683 = vperm.xlu1 %2183, %v1657_v32   ;;  %2226 = vtanh.f32 %v695_v48 }
  0xf3   : > { %v569_v36 = vadd.f32 %v537_v27, %v423_v18  ;;  %v741_v18 = vld [vmem:[%s3387_s3 + $0x28] sm:$0xff] }
  0xf4   : > { %v367_v35 = vpop.permute.xlu1 %366 }
  0xf5   : > { %v424_v8 = vmul.f32 %v2853_v26, %v367_v35  ;;  %v425_v11 = vmul.f32 %v2861_v30, %v367_v35 }
  0xf6   : > { %1688 = vperm.xlu1 %2183, %v1658_v21   ;;  %v568_v21 = vadd.f32 %v536_v24, %v422_v17  ;;  %v748_v17 = vld [vmem:[%s3387_s3 + $0x60] sm:$0xff]  ;;  %v771_v24 = vpop.permute.xlu0 %770 }
  0xf9   : > { %v484_v43 = vpop.permute.xlu1 %483  ;;  %v2221_v44 = vpop.eup %2220 }
  0xfa   : > { %v2223_v45 = vpop.eup %2222  ;;  %1693 = vperm.xlu1 %2183, %v1659_v40   ;;  %v2029_v47 = vpack.c.bf16 %v2217_v39, %v2221_v44  ;;  %v538_v1 = vmul.f32 %v2850_v25, %v484_v43  ;;  %v539_v4 = vmul.f32 %v2858_v29, %v484_v43  ;;  %v1666_v39 = vld [vmem:[%s3389_s5 + $0x58] sm:$0xff] }
  0xfb   : > { %v2027_v49 = vpack.c.bf16 %v2219_v41, %v2223_v45  ;;  %v2225_v13 = vpop.eup %2224  ;;  %v541_v41 = vmul.f32 %v2858_v29, %v2837_v16  ;;  %v1668_v45 = vld [vmem:[%s3389_s5 + $0x68] sm:$0xff] }
  0xfc   : > { %v570_v0 = vadd.f32 %v538_v1, %v424_v8  ;;  %v571_v5 = vadd.f32 %v539_v4, %v425_v11  ;;  %v2227_v15 = vpop.eup %2226  ;;  %v736_v4 = vld [vmem:[%s3387_s3] sm:$0xff]  ;;  %v737_v8 = vld [vmem:[%s3387_s3 + $0x8] sm:$0xff] }
  0xfd   : > { %2028 = vmatprep.subr.bf16.mxu0 %v2027_v49  ;;  %2111 = vmatprep.subr.bf16.mxu1 %v2027_v49  ;;  %v745_v11 = vld [vmem:[%s3387_s3 + $0x48] sm:$0xff] }
  0xfe   : > { %v645_v56 = vpop.permute.xlu1 %644  ;;  %1698 = vperm.xlu1 %2183, %v1660_v51   ;;  %2030 = vmatpush1.bf16.msra.mxu0 %v2029_v47  ;;  %v698_v28 = vadd.f32 %v660_v20, %v570_v0  ;;  %v699_v33 = vadd.f32 %v660_v20, %v571_v5  ;;  %v746_v0 = vld [vmem:[%s3387_s3 + $0x50] sm:$0xff]  ;;  %v747_v5 = vld [vmem:[%s3387_s3 + $0x58] sm:$0xff] }
  0xff   : > { %v692_v59 = vadd.f32 %v645_v56, %v564_v52  ;;  %v693_v50 = vadd.f32 %v645_v56, %v565_v55  ;;  %2119 = vmatpush1.bf16.msra.mxu1 %v2029_v47  ;;  %v750_v20 = vld [vmem:[%s3387_s3 + $0x70] sm:$0xff] }
 0x101   : > { %2228 = vtanh.f32 %v692_v59 }
 0x102   : > { %v372_v60 = vpop.permute.xlu1 %371  ;;  %2230 = vtanh.f32 %v693_v50  ;;  %1703 = vperm.xlu1 %2183, %v1661_v2  }
 0x103   : > { %v426_v31 = vmul.f32 %v2853_v26, %v372_v60  ;;  %v427_v37 = vmul.f32 %v2861_v30, %v372_v60  ;;  %2232 = vtanh.f32 %v698_v28  ;;  %v781_v28 = vpop.permute.xlu0 %780 }
 0x104   : > { %2234 = vtanh.f32 %v699_v33 }
 0x105   : > { %v572_v57 = vadd.f32 %v540_v7, %v426_v31  ;;  %v573_v44 = vadd.f32 %v541_v41, %v427_v37 }
 0x106   : > { %v377_v53 = vpop.permute.xlu1 %376  ;;  %1708 = vperm.xlu1 %2183, %v1662_v63  }
 0x107   : > { %v428_v10 = vmul.f32 %v2853_v26, %v377_v53  ;;  %v429_v46 = vmul.f32 %v2861_v30, %v377_v53  ;;  %v744_v53 = vld [vmem:[%s3387_s3 + $0x40] sm:$0xff]  ;;  %v3136_v33 = vpop.permute.xlu0 %790 }
 0x10a   : > { %1713 = vperm.xlu1 %2183, %v1663_v12   ;;  %v738_v12 = vld [vmem:[%s3387_s3 + $0x10] sm:$0xff] }
 0x10b   : > { %v492_v19 = vpop.permute.xlu1 %491  ;;  %v2229_v61 = vpop.eup %2228 }
 0x10c   : > { %v2231_v6 = vpop.eup %2230  ;;  %v2033_v32 = vpack.c.bf16 %v2225_v13, %v2229_v61  ;;  %v542_v54 = vmul.f32 %v2850_v25, %v492_v19  ;;  %v543_v42 = vmul.f32 %v2858_v29, %v492_v19  ;;  %v739_v13 = vld [vmem:[%s3387_s3 + $0x18] sm:$0xff]  ;;  %v749_v19 = vld [vmem:[%s3387_s3 + $0x68] sm:$0xff]  ;;  %v742_v61 = vld [vmem:[%s3387_s3 + $0x30] sm:$0xff]  ;;  %v3140_v31 = vpop.permute.xlu0 %800 }
 0x10d   : > { %v2031_v35 = vpack.c.bf16 %v2227_v15, %v2231_v6  ;;  %v2233_v48 = vpop.eup %2232  ;;  %v740_v15 = vld [vmem:[%s3387_s3 + $0x20] sm:$0xff]  ;;  %v751_v6 = vld [vmem:[%s3387_s3 + $0x78] sm:$0xff] }
 0x10e   : > { %1718 = vperm.xlu1 %2183, %v1664_v58   ;;  %v574_v25 = vadd.f32 %v542_v54, %v428_v10  ;;  %v575_v47 = vadd.f32 %v543_v42, %v429_v46  ;;  %v2235_v26 = vpop.eup %2234  ;;  %v743_v58 = vld [vmem:[%s3387_s3 + $0x38] sm:$0xff] }
 0x10f   : > { %2032 = vmatprep.subr.bf16.mxu0 %v2031_v35  ;;  %2112 = vmatprep.subr.bf16.mxu1 %v2031_v35 }
 0x110   : > { %v655_v38 = vpop.permute.xlu1 %654  ;;  %2034 = vmatpush1.bf16.msra.mxu0 %v2033_v32  ;;  %2120 = vmatpush1.bf16.msra.mxu1 %v2033_v32 }
 0x111   : > { %v696_v34 = vadd.f32 %v655_v38, %v568_v21  ;;  %v697_v40 = vadd.f32 %v655_v38, %v569_v36  ;;  %v811_v36 = vpop.permute.xlu0 %810 }
 0x112   : > { %1728 = vperm.xlu1 %2183, %v1666_v39  }
 0x113   : > { %2236 = vtanh.f32 %v696_v34 }
 0x114   : > { %2238 = vtanh.f32 %v697_v40  ;;  %v665_v43 = vpop.permute.xlu1 %664 }
 0x115   : > { %v700_v16 = vadd.f32 %v665_v43, %v572_v57  ;;  %v701_v14 = vadd.f32 %v665_v43, %v573_v44 }
 0x116   : > { %1738 = vperm.xlu1 %2183, %v1668_v45  }
 0x117   : > { %2240 = vtanh.f32 %v700_v16 }
 0x118   : > { %v670_v29 = vpop.permute.xlu1 %669  ;;  %2242 = vtanh.f32 %v701_v14 }
 0x119   : > { %v702_v49 = vadd.f32 %v670_v29, %v574_v25  ;;  %v703_v51 = vadd.f32 %v670_v29, %v575_v47  ;;  %v821_v25 = vpop.permute.xlu0 %820 }
 0x11a   : > { %1748 = vperm.xlu1 %2183, %v1670_v23  }
 0x11b   : > { %2244 = vtanh.f32 %v702_v49 }
 0x11c   : > { %2246 = vtanh.f32 %v703_v51  ;;  %v776_v27 = vpop.permute.xlu1 %775 }
 0x11d   : > { %v2237_v30 = vpop.eup %2236 }
 0x11e   : > { %v2239_v52 = vpop.eup %2238  ;;  %v2037_v55 = vpack.c.bf16 %v2233_v48, %v2237_v30 }
 0x11f   : > { %v2035_v56 = vpack.c.bf16 %v2235_v26, %v2239_v52 }
 0x120   : > { %v786_v32 = vpop.permute.xlu1 %785 }
 0x121   : > { %2036 = vmatprep.subr.bf16.mxu0 %v2035_v56  ;;  %2113 = vmatprep.subr.bf16.mxu1 %v2035_v56  ;;  %v2241_v59 = vpop.eup %2240 }
 0x122   : > { %2038 = vmatpush1.bf16.msra.mxu0 %v2037_v55  ;;  %2121 = vmatpush1.bf16.msra.mxu1 %v2037_v55  ;;  %v2243_v50 = vpop.eup %2242 }
 0x124   : > { %v3138_v35 = vpop.permute.xlu1 %795 }
 0x125   : > { %v2245_v2 = vpop.eup %2244 }
 0x126   : > { %v2247_v60 = vpop.eup %2246  ;;  %v2041_v63 = vpack.c.bf16 %v2245_v2, %v2241_v59 }
 0x127   : > { %v2039_v1 = vpack.c.bf16 %v2247_v60, %v2243_v50 }
 0x128   : > { %v3142_v21 = vpop.permute.xlu1 %805 }
 0x129   : > { %2040 = vmatprep.subr.bf16.mxu0 %v2039_v1  ;;  %2114 = vmatprep.subr.bf16.mxu1 %v2039_v1 }
 0x12a   : > { %2042 = vmatpush1.bf16.msra.mxu0 %v2041_v63  ;;  %2122 = vmatpush1.bf16.msra.mxu1 %v2041_v63 }
 0x12c   : > { %v816_v42 = vpop.permute.xlu1 %815 }
 0x12d   : > { %913 = vmatmul.mubr.f32.vlgmr.msra.gmra.mrb[0].mxu0 %v736_v4  ;;  %961 = vmatmul.mubr.f32.vlgmr.msra.gmra.mrb[0].mxu1 %v744_v53 }
 0x12e   : > { %918 = vmatprep.mubr.f32.mxu0 %v2506_v22  ;;  %966 = vmatprep.mubr.f32.mxu1 %v2506_v22 }
 0x130   : > { %v826_v52 = vpop.permute.xlu1 %825 }
 0x131   : > { %919 = vmatmul.mubr.f32.gmra.mrb[2].mxu0 %v737_v8  ;;  %967 = vmatmul.mubr.f32.gmra.mrb[2].mxu1 %v745_v11  ;;  %v831_v11 = vpop.permute.xlu0 %830 }
 0x132   : > { %924 = vmatprep.mubr.f32.mxu0 %v2506_v22  ;;  %972 = vmatprep.mubr.f32.mxu1 %v2506_v22 }
 0x135   : > { %925 = vmatmul.mubr.f32.gmra.mrb[4].mxu0 %v738_v12  ;;  %973 = vmatmul.mubr.f32.gmra.mrb[4].mxu1 %v746_v0 }
 0x136   : > { %930 = vmatprep.mubr.f32.mxu0 %v2506_v22  ;;  %978 = vmatprep.mubr.f32.mxu1 %v2506_v22 }
 0x139   : > { %931 = vmatmul.mubr.f32.gmra.mrb[6].mxu0 %v739_v13  ;;  %979 = vmatmul.mubr.f32.gmra.mrb[6].mxu1 %v747_v5 }
 0x13a   : > { %936 = vmatprep.mubr.f32.mxu0 %v2506_v22  ;;  %984 = vmatprep.mubr.f32.mxu1 %v2506_v22 }
 0x13d   : > { %937 = vmatmul.mubr.f32.gmra.mrb[8].mxu0 %v740_v15  ;;  %985 = vmatmul.mubr.f32.gmra.mrb[8].mxu1 %v748_v17 }
 0x13e   : > { %942 = vmatprep.mubr.f32.mxu0 %v2506_v22  ;;  %990 = vmatprep.mubr.f32.mxu1 %v2506_v22 }
 0x141   : > { %943 = vmatmul.mubr.f32.gmra.mrb[10].mxu0 %v741_v18  ;;  %991 = vmatmul.mubr.f32.gmra.mrb[10].mxu1 %v749_v19 }
 0x142   : > { %948 = vmatprep.mubr.f32.mxu0 %v2506_v22  ;;  %996 = vmatprep.mubr.f32.mxu1 %v2506_v22 }
 0x145   : > { %949 = vmatmul.mubr.f32.gmra.mrb[12].mxu0 %v742_v61  ;;  %997 = vmatmul.mubr.f32.gmra.mrb[12].mxu1 %v750_v20 }
 0x146   : > { %954 = vmatprep.mubr.f32.mxu0 %v2506_v22  ;;  %1002 = vmatprep.mubr.f32.mxu1 %v2506_v22 }
 0x149   : > { %955 = vmatmul.mubr.f32.gmra.mrb[14].mxu0 %v743_v58  ;;  %1003 = vmatmul.mubr.f32.gmra.mrb[14].mxu1 %v751_v6 }
 0x14a   : > { %1219 = vmatprep.mubr.f32.mxu1 %v2506_v22  ;;  %1526 = vmatprep.mubr.f32.mxu0 %v2506_v22 }
 0x200   : > { %v914_v37 = vpop.f32.mrb[0].mxu0  ;;  %v962_v38 = vpop.f32.mrb[0].mxu1 }
 0x201   : > { %v915_v39 = vadd.f32 %v914_v37, %v771_v24  ;;  %v963_v7 = vadd.f32 %v962_v38, %v811_v36  ;;  %v916_v34 = vpop.f32.mrb[1].mxu0  ;;  %v964_v40 = vpop.f32.mrb[1].mxu1 }
 0x202   : > { %v917_v41 = vadd.f32 %v916_v34, %v771_v24  ;;  %v965_v54 = vadd.f32 %v964_v40, %v811_v36 }
 0x203   : > { %2248 = vtanh.f32 %v915_v39 }
 0x204   : > { %2250 = vtanh.f32 %v963_v7  ;;  %v920_v57 = vpop.f32.mrb[2].mxu0  ;;  %v968_v43 = vpop.f32.mrb[2].mxu1 }
 0x205   : > { %2252 = vtanh.f32 %v917_v41  ;;  %v921_v44 = vadd.f32 %v920_v57, %v776_v27  ;;  %v969_v45 = vadd.f32 %v968_v43, %v816_v42  ;;  %v922_v10 = vpop.f32.mrb[3].mxu0  ;;  %v970_v46 = vpop.f32.mrb[3].mxu1 }
 0x206   : > { %2254 = vtanh.f32 %v965_v54  ;;  %v923_v16 = vadd.f32 %v922_v10, %v776_v27  ;;  %v971_v14 = vadd.f32 %v970_v46, %v816_v42  ;;  %v836_v27 = vpop.permute.xlu1 %835 }
 0x207   : > { %2256 = vtanh.f32 %v921_v44  ;;  %v841_v44 = vpop.permute.xlu0 %840 }
 0x208   : > { %2258 = vtanh.f32 %v969_v45  ;;  %v926_v47 = vpop.f32.mrb[4].mxu0  ;;  %v974_v29 = vpop.f32.mrb[4].mxu1 }
 0x209   : > { %2260 = vtanh.f32 %v923_v16  ;;  %v927_v23 = vadd.f32 %v926_v47, %v781_v28  ;;  %v975_v49 = vadd.f32 %v974_v29, %v821_v25  ;;  %v928_v51 = vpop.f32.mrb[5].mxu0  ;;  %v976_v48 = vpop.f32.mrb[5].mxu1 }
 0x20a   : > { %2262 = vtanh.f32 %v971_v14  ;;  %v929_v26 = vadd.f32 %v928_v51, %v781_v28  ;;  %v977_v30 = vadd.f32 %v976_v48, %v821_v25 }
 0x20b   : > { %2264 = vtanh.f32 %v927_v23 }
 0x20c   : > { %2266 = vtanh.f32 %v975_v49  ;;  %v932_v55 = vpop.f32.mrb[6].mxu0  ;;  %v980_v56 = vpop.f32.mrb[6].mxu1 }
 0x20d   : > { %v2249_v59 = vpop.eup %2248  ;;  %2268 = vtanh.f32 %v929_v26  ;;  %v933_v50 = vadd.f32 %v932_v55, %v786_v32  ;;  %v981_v2 = vadd.f32 %v980_v56, %v826_v52  ;;  %v934_v60 = vpop.f32.mrb[7].mxu0 }
 0x20e   : > { %v982_v63 = vpop.f32.mrb[7].mxu1  ;;  %v3144_v1 = vpop.eup %2250  ;;  %2270 = vtanh.f32 %v977_v30  ;;  %v935_v4 = vadd.f32 %v934_v60, %v786_v32 }
 0x20f   : > { %v983_v53 = vadd.f32 %v982_v63, %v826_v52  ;;  %v2253_v8 = vpop.eup %2252  ;;  %2272 = vtanh.f32 %v933_v50  ;;  %v846_v26 = vpop.permute.xlu1 %845 }
 0x210   : > { %v3146_v12 = vpop.eup %2254  ;;  %2274 = vtanh.f32 %v981_v2  ;;  %v938_v0 = vpop.f32.mrb[8].mxu0 }
 0x211   : > { %v986_v13 = vpop.f32.mrb[8].mxu1  ;;  %v2257_v5 = vpop.eup %2256  ;;  %2276 = vtanh.f32 %v935_v4  ;;  %v939_v15 = vadd.f32 %v938_v0, %v3136_v33 }
 0x212   : > { %v987_v17 = vadd.f32 %v986_v13, %v831_v11  ;;  %v940_v18 = vpop.f32.mrb[9].mxu0  ;;  %v988_v19 = vpop.f32.mrb[9].mxu1  ;;  %2278 = vtanh.f32 %v983_v53  ;;  %v2045_v6 = vpack.c.bf16 %v2257_v5, %v2249_v59 }
 0x213   : > { %v3149_v61 = vpop.eup %2258  ;;  %v941_v20 = vadd.f32 %v940_v18, %v3136_v33  ;;  %v989_v58 = vadd.f32 %v988_v19, %v831_v11  ;;  %2280 = vtanh.f32 %v939_v15 }
 0x214   : > { %v2261_v24 = vpop.eup %2260  ;;  %v2061_v28 = vpack.c.bf16 %v3149_v61, %v3144_v1  ;;  %2282 = vtanh.f32 %v987_v17  ;;  %v944_v36 = vpop.f32.mrb[10].mxu0  ;;  %v1943_v1 = vld [vmem:[%s3387_s3 + $0x90] sm:$0xff]  ;;  %v1944_v61 = vld [vmem:[%s3387_s3 + $0x98] sm:$0xff] }
 0x215   : > { %v3154_v32 = vpop.eup %2262  ;;  %v992_v37 = vpop.f32.mrb[10].mxu1  ;;  %v2043_v38 = vpack.c.bf16 %v2261_v24, %v2253_v8  ;;  %2284 = vtanh.f32 %v941_v20  ;;  %v945_v7 = vadd.f32 %v944_v36, %v3138_v35 }
 0x216   : > { %v2265_v39 = vpop.eup %2264  ;;  %v993_v34 = vadd.f32 %v992_v37, %v836_v27  ;;  %v946_v33 = vpop.f32.mrb[11].mxu0  ;;  %v2059_v41 = vpack.c.bf16 %v3154_v32, %v3146_v12  ;;  %2286 = vtanh.f32 %v989_v58  ;;  %v1942_v12 = vld [vmem:[%s3387_s3 + $0x88] sm:$0xff] }
 0x217   : > { %v994_v40 = vpop.f32.mrb[11].mxu1  ;;  %v3159_v54 = vpop.eup %2266  ;;  %v947_v42 = vadd.f32 %v946_v33, %v3138_v35  ;;  %2044 = vmatprep.subr.bf16.mxu1 %v2043_v38  ;;  %2288 = vtanh.f32 %v945_v7  ;;  %v1946_v32 = vld [vmem:[%s3387_s3 + $0xa8] sm:$0xff] }
 0x218   : > { %v995_v57 = vadd.f32 %v994_v40, %v836_v27  ;;  %v2269_v43 = vpop.eup %2268  ;;  %2046 = vmatpush1.bf16.msra.mxu1 %v2045_v6  ;;  %2290 = vtanh.f32 %v993_v34  ;;  %v950_v10 = vpop.f32.mrb[12].mxu0 }
 0x219   : > { %v3162_v45 = vpop.eup %2270  ;;  %v998_v46 = vpop.f32.mrb[12].mxu1  ;;  %2292 = vtanh.f32 %v947_v42  ;;  %v951_v14 = vadd.f32 %v950_v10, %v3140_v31  ;;  %v1941_v42 = vld [vmem:[%s3387_s3 + $0x80] sm:$0xff]  ;;  %v1952_v10 = vld [vmem:[%s3387_s3 + $0xd8] sm:$0xff] }
 0x21a   : > { %v2273_v16 = vpop.eup %2272  ;;  %v999_v25 = vadd.f32 %v998_v46, %v841_v44  ;;  %v952_v47 = vpop.f32.mrb[13].mxu0  ;;  %2294 = vtanh.f32 %v995_v57  ;;  %v1948_v57 = vld [vmem:[%s3387_s3 + $0xb8] sm:$0xff]  ;;  %v1953_v46 = vld [vmem:[%s3387_s3 + $0xe0] sm:$0xff] }
 0x21b   : > { %v1000_v29 = vpop.f32.mrb[13].mxu1  ;;  %v2275_v23 = vpop.eup %2274  ;;  %v953_v35 = vadd.f32 %v952_v47, %v3140_v31  ;;  %v2049_v51 = vpack.c.bf16 %v2273_v16, %v2265_v39  ;;  %2296 = vtanh.f32 %v951_v14  ;;  %v1954_v16 = vld [vmem:[%s3387_s3 + $0xe8] sm:$0xff]  ;;  %v1955_v14 = vld [vmem:[%s3387_s3 + $0xf0] sm:$0xff] }
 0x21c   : > { %v1001_v49 = vadd.f32 %v1000_v29, %v841_v44  ;;  %v2277_v48 = vpop.eup %2276  ;;  %v2065_v30 = vpack.c.bf16 %v2275_v23, %v3159_v54  ;;  %2298 = vtanh.f32 %v999_v25  ;;  %v956_v55 = vpop.f32.mrb[14].mxu0  ;;  %v1950_v44 = vld [vmem:[%s3387_s3 + $0xc8] sm:$0xff]  ;;  %v1956_v25 = vld [vmem:[%s3387_s3 + $0xf8] sm:$0xff] }
 0x21d   : > { %v2279_v52 = vpop.eup %2278  ;;  %v1004_v56 = vpop.f32.mrb[14].mxu1  ;;  %v2047_v59 = vpack.c.bf16 %v2277_v48, %v2269_v43  ;;  %2300 = vtanh.f32 %v953_v35  ;;  %v957_v2 = vadd.f32 %v956_v55, %v3142_v21  ;;  %v1949_v43 = vld [vmem:[%s3387_s3 + $0xc0] sm:$0xff] }
 0x21e   : > { %v2281_v50 = vpop.eup %2280  ;;  %v1005_v60 = vadd.f32 %v1004_v56, %v846_v26  ;;  %v958_v63 = vpop.f32.mrb[15].mxu0  ;;  %v2063_v31 = vpack.c.bf16 %v2279_v52, %v3162_v45  ;;  %2302 = vtanh.f32 %v1001_v49  ;;  %v1951_v45 = vld [vmem:[%s3387_s3 + $0xd0] sm:$0xff] }
 0x21f   : > { %v1006_v4 = vpop.f32.mrb[15].mxu1  ;;  %v2283_v53 = vpop.eup %2282  ;;  %v959_v8 = vadd.f32 %v958_v63, %v3142_v21  ;;  %2048 = vmatprep.subr.bf16.mxu1 %v2047_v59  ;;  %2304 = vtanh.f32 %v957_v2 }
 0x220   : > { %v1007_v11 = vadd.f32 %v1006_v4, %v846_v26  ;;  %v2285_v0 = vpop.eup %2284  ;;  %2050 = vmatpush1.bf16.msra.mxu1 %v2049_v51  ;;  %2306 = vtanh.f32 %v1005_v60  ;;  %v1078_v47 = vpop.permute.xlu0 %1077 }
 0x221   : > { %v2287_v13 = vpop.eup %2286  ;;  %2308 = vtanh.f32 %v959_v8  ;;  %v1083_v51 = vpop.permute.xlu1 %1082 }
 0x222   : > { %v2289_v5 = vpop.eup %2288  ;;  %2310 = vtanh.f32 %v1007_v11 }
 0x223   : > { %v2291_v15 = vpop.eup %2290  ;;  %v2053_v17 = vpack.c.bf16 %v2289_v5, %v2281_v50 }
 0x224   : > { %v2293_v18 = vpop.eup %2292  ;;  %v2069_v19 = vpack.c.bf16 %v2291_v15, %v2283_v53  ;;  %v1088_v55 = vpop.permute.xlu0 %1087 }
 0x225   : > { %v2295_v20 = vpop.eup %2294  ;;  %v2051_v58 = vpack.c.bf16 %v2293_v18, %v2285_v0  ;;  %v1093_v60 = vpop.permute.xlu1 %1092 }
 0x226   : > { %v2297_v6 = vpop.eup %2296  ;;  %v2067_v24 = vpack.c.bf16 %v2295_v20, %v2287_v13 }
 0x227   : > { %v2299_v27 = vpop.eup %2298  ;;  %2052 = vmatprep.subr.bf16.mxu1 %v2051_v58 }
 0x228   : > { %v2301_v21 = vpop.eup %2300  ;;  %2054 = vmatpush1.bf16.msra.mxu1 %v2053_v17  ;;  %v1098_v0 = vpop.permute.xlu0 %1097 }
 0x229   : > { %v2303_v36 = vpop.eup %2302 }
 0x22a   : > { %v2305_v37 = vpop.eup %2304 }
 0x22b   : > { %v2307_v38 = vpop.eup %2306  ;;  %v2057_v39 = vpack.c.bf16 %v2305_v37, %v2297_v6  ;;  %v1103_v6 = vpop.permute.xlu1 %1102 }
 0x22c   : > { %v2309_v7 = vpop.eup %2308  ;;  %v2073_v34 = vpack.c.bf16 %v2307_v38, %v2299_v27 }
 0x22d   : > { %v2311_v33 = vpop.eup %2310  ;;  %v2055_v40 = vpack.c.bf16 %v2309_v7, %v2301_v21 }
 0x22e   : > { %v2071_v54 = vpack.c.bf16 %v2311_v33, %v2303_v36 }
 0x22f   : > { %2056 = vmatprep.subr.bf16.mxu1 %v2055_v40 }
 0x230   : > { %2058 = vmatpush1.bf16.msra.mxu1 %v2057_v39  ;;  %v1108_v39 = vpop.permute.xlu0 %1107 }
 0x231   : > { %2060 = vmatprep.subr.bf16.mxu1 %v2059_v41  ;;  %v1947_v41 = vld [vmem:[%s3387_s3 + $0xb0] sm:$0xff] }
 0x234   : > { %2062 = vmatpush1.bf16.msra.mxu1 %v2061_v28  ;;  %v1945_v28 = vld [vmem:[%s3387_s3 + $0xa0] sm:$0xff] }
 0x235   : > { %2064 = vmatprep.subr.bf16.mxu1 %v2063_v31 }
 0x238   : > { %2066 = vmatpush1.bf16.msra.mxu1 %v2065_v30 }
 0x239   : > { %2068 = vmatprep.subr.bf16.mxu1 %v2067_v24 }
 0x23c   : > { %2070 = vmatpush1.bf16.msra.mxu1 %v2069_v19 }
 0x23d   : > { %2072 = vmatprep.subr.bf16.mxu1 %v2071_v54 }
 0x240   : > { %2074 = vmatpush1.bf16.msra.mxu1 %v2073_v34 }
 0x243   : > { %1220 = vmatmul.mubr.f32.vlgmr.msra.gmra.mrb[16].mxu1 %v1941_v42 }
 0x244   : > { %1225 = vmatprep.mubr.f32.mxu1 %v2506_v22 }
 0x247   : > { %1226 = vmatmul.mubr.f32.gmra.mrb[18].mxu1 %v1942_v12 }
 0x248   : > { %1231 = vmatprep.mubr.f32.mxu1 %v2506_v22 }
 0x24b   : > { %1232 = vmatmul.mubr.f32.gmra.mrb[20].mxu1 %v1943_v1 }
 0x24c   : > { %1237 = vmatprep.mubr.f32.mxu1 %v2506_v22 }
 0x24f   : > { %1238 = vmatmul.mubr.f32.gmra.mrb[22].mxu1 %v1944_v61  ;;  %v1113_v61 = vpop.permute.xlu1 %1112 }
 0x250   : > { %1243 = vmatprep.mubr.f32.mxu1 %v2506_v22 }
 0x253   : > { %1244 = vmatmul.mubr.f32.gmra.mrb[24].mxu1 %v1945_v28 }
 0x254   : > { %1249 = vmatprep.mubr.f32.mxu1 %v2506_v22 }
 0x257   : > { %1250 = vmatmul.mubr.f32.gmra.mrb[26].mxu1 %v1946_v32 }
 0x258   : > { %1255 = vmatprep.mubr.f32.mxu1 %v2506_v22 }
 0x25b   : > { %1256 = vmatmul.mubr.f32.gmra.mrb[28].mxu1 %v1947_v41 }
 0x25c   : > { %1261 = vmatprep.mubr.f32.mxu1 %v2506_v22 }
 0x25f   : > { %1262 = vmatmul.mubr.f32.gmra.mrb[30].mxu1 %v1948_v57 }
 0x260   : > { %1267 = vmatprep.mubr.f32.mxu1 %v2506_v22 }
 0x263   : > { %1268 = vmatmul.mubr.f32.gmra.mrb[32].mxu1 %v1949_v43 }
 0x264   : > { %1273 = vmatprep.mubr.f32.mxu1 %v2506_v22 }
 0x267   : > { %1274 = vmatmul.mubr.f32.gmra.mrb[34].mxu1 %v1950_v44 }
 0x268   : > { %1279 = vmatprep.mubr.f32.mxu1 %v2506_v22 }
 0x26b   : > { %1280 = vmatmul.mubr.f32.gmra.mrb[36].mxu1 %v1951_v45  ;;  %v1118_v45 = vpop.permute.xlu0 %1117 }
 0x26c   : > { %1285 = vmatprep.mubr.f32.mxu1 %v2506_v22 }
 0x26f   : > { %1286 = vmatmul.mubr.f32.gmra.mrb[38].mxu1 %v1952_v10 }
 0x270   : > { %1291 = vmatprep.mubr.f32.mxu1 %v2506_v22 }
 0x273   : > { %1292 = vmatmul.mubr.f32.gmra.mrb[40].mxu1 %v1953_v46 }
 0x274   : > { %1297 = vmatprep.mubr.f32.mxu1 %v2506_v22 }
 0x277   : > { %1298 = vmatmul.mubr.f32.gmra.mrb[42].mxu1 %v1954_v16 }
 0x278   : > { %1303 = vmatprep.mubr.f32.mxu1 %v2506_v22 }
 0x27b   : > { %1304 = vmatmul.mubr.f32.gmra.mrb[44].mxu1 %v1955_v14 }
 0x27c   : > { %1309 = vmatprep.mubr.f32.mxu1 %v2506_v22 }
 0x27f   : > { %1310 = vmatmul.mubr.f32.gmra.mrb[46].mxu1 %v1956_v25 }
 0x316   : > { %v1221_v29 = vpop.f32.mrb[16].mxu1 }
 0x317   : > { %v1222_v23 = vadd.f32 %v1221_v29, %v1078_v47  ;;  %v1223_v35 = vpop.f32.mrb[17].mxu1 }
 0x318   : > { %v1224_v49 = vadd.f32 %v1223_v35, %v1078_v47  ;;  %v1123_v35 = vpop.permute.xlu1 %1122 }
 0x319   : > { %2312 = vtanh.f32 %v1222_v23 }
 0x31a   : > { %v1227_v48 = vpop.f32.mrb[18].mxu1  ;;  %2314 = vtanh.f32 %v1224_v49 }
 0x31b   : > { %v1228_v26 = vadd.f32 %v1227_v48, %v1083_v51  ;;  %v1229_v30 = vpop.f32.mrb[19].mxu1 }
 0x31c   : > { %v1230_v52 = vadd.f32 %v1229_v30, %v1083_v51 }
 0x31d   : > { %2316 = vtanh.f32 %v1228_v26 }
 0x31e   : > { %2318 = vtanh.f32 %v1230_v52  ;;  %v1233_v56 = vpop.f32.mrb[20].mxu1 }
 0x31f   : > { %v1234_v59 = vadd.f32 %v1233_v56, %v1088_v55  ;;  %v1235_v50 = vpop.f32.mrb[21].mxu1 }
 0x320   : > { %v1236_v2 = vadd.f32 %v1235_v50, %v1088_v55  ;;  %v1128_v55 = vpop.permute.xlu0 %1127 }
 0x321   : > { %2320 = vtanh.f32 %v1234_v59 }
 0x322   : > { %v1239_v63 = vpop.f32.mrb[22].mxu1  ;;  %2322 = vtanh.f32 %v1236_v2 }
 0x323   : > { %v1240_v4 = vadd.f32 %v1239_v63, %v1093_v60  ;;  %v1241_v31 = vpop.f32.mrb[23].mxu1  ;;  %v2313_v8 = vpop.eup %2312 }
 0x324   : > { %v1242_v53 = vadd.f32 %v1241_v31, %v1093_v60  ;;  %v2315_v11 = vpop.eup %2314 }
 0x325   : > { %2324 = vtanh.f32 %v1240_v4 }
 0x326   : > { %2326 = vtanh.f32 %v1242_v53  ;;  %v1245_v13 = vpop.f32.mrb[24].mxu1  ;;  %v1133_v53 = vpop.permute.xlu1 %1132 }
 0x327   : > { %v2317_v5 = vpop.eup %2316  ;;  %v1246_v15 = vadd.f32 %v1245_v13, %v1098_v0  ;;  %v1247_v17 = vpop.f32.mrb[25].mxu1 }
 0x328   : > { %v2319_v18 = vpop.eup %2318  ;;  %v1248_v19 = vadd.f32 %v1247_v17, %v1098_v0  ;;  %v2077_v20 = vpack.c.bf16 %v2317_v5, %v2313_v8  ;;  %v1138_v17 = vpop.permute.xlu0 %1137 }
 0x329   : > { %v2075_v58 = vpack.c.bf16 %v2319_v18, %v2315_v11  ;;  %2328 = vtanh.f32 %v1246_v15 }
 0x32a   : > { %v1251_v24 = vpop.f32.mrb[26].mxu1  ;;  %2330 = vtanh.f32 %v1248_v19 }
 0x32b   : > { %v1252_v27 = vadd.f32 %v1251_v24, %v1103_v6  ;;  %v1253_v21 = vpop.f32.mrb[27].mxu1  ;;  %2076 = vmatprep.subr.bf16.mxu0 %v2075_v58  ;;  %v2321_v37 = vpop.eup %2320 }
 0x32c   : > { %v1254_v36 = vadd.f32 %v1253_v21, %v1103_v6  ;;  %2078 = vmatpush1.bf16.msra.mxu0 %v2077_v20  ;;  %v2323_v38 = vpop.eup %2322 }
 0x32d   : > { %2332 = vtanh.f32 %v1252_v27 }
 0x32e   : > { %2334 = vtanh.f32 %v1254_v36  ;;  %v1257_v7 = vpop.f32.mrb[28].mxu1  ;;  %v1143_v36 = vpop.permute.xlu1 %1142 }
 0x32f   : > { %v2325_v34 = vpop.eup %2324  ;;  %v1258_v33 = vadd.f32 %v1257_v7, %v1108_v39  ;;  %v1259_v40 = vpop.f32.mrb[29].mxu1 }
 0x330   : > { %v2327_v54 = vpop.eup %2326  ;;  %v1260_v42 = vadd.f32 %v1259_v40, %v1108_v39  ;;  %v2081_v12 = vpack.c.bf16 %v2325_v34, %v2321_v37  ;;  %v1148_v40 = vpop.permute.xlu0 %1147 }
 0x331   : > { %v2079_v1 = vpack.c.bf16 %v2327_v54, %v2323_v38  ;;  %2336 = vtanh.f32 %v1258_v33 }
 0x332   : > { %v1263_v28 = vpop.f32.mrb[30].mxu1  ;;  %2338 = vtanh.f32 %v1260_v42 }
 0x333   : > { %v1264_v32 = vadd.f32 %v1263_v28, %v1113_v61  ;;  %v1265_v41 = vpop.f32.mrb[31].mxu1  ;;  %2080 = vmatprep.subr.bf16.mxu0 %v2079_v1  ;;  %v2329_v43 = vpop.eup %2328 }
 0x334   : > { %v1266_v57 = vadd.f32 %v1265_v41, %v1113_v61  ;;  %2082 = vmatpush1.bf16.msra.mxu0 %v2081_v12  ;;  %v2331_v44 = vpop.eup %2330 }
 0x335   : > { %2340 = vtanh.f32 %v1264_v32 }
 0x336   : > { %2342 = vtanh.f32 %v1266_v57  ;;  %v1269_v10 = vpop.f32.mrb[32].mxu1  ;;  %v1153_v57 = vpop.permute.xlu1 %1152 }
 0x337   : > { %v2333_v46 = vpop.eup %2332  ;;  %v1270_v16 = vadd.f32 %v1269_v10, %v1118_v45  ;;  %v1271_v14 = vpop.f32.mrb[33].mxu1 }
 0x338   : > { %v2335_v25 = vpop.eup %2334  ;;  %v1272_v47 = vadd.f32 %v1271_v14, %v1118_v45  ;;  %v2085_v29 = vpack.c.bf16 %v2333_v46, %v2329_v43 }
 0x339   : > { %v2083_v23 = vpack.c.bf16 %v2335_v25, %v2331_v44  ;;  %2344 = vtanh.f32 %v1270_v16 }
 0x33a   : > { %v1275_v49 = vpop.f32.mrb[34].mxu1  ;;  %2346 = vtanh.f32 %v1272_v47 }
 0x33b   : > { %v1276_v51 = vadd.f32 %v1275_v49, %v1123_v35  ;;  %v1277_v48 = vpop.f32.mrb[35].mxu1  ;;  %2084 = vmatprep.subr.bf16.mxu0 %v2083_v23  ;;  %v2337_v30 = vpop.eup %2336 }
 0x33c   : > { %v1278_v26 = vadd.f32 %v1277_v48, %v1123_v35  ;;  %2086 = vmatpush1.bf16.msra.mxu0 %v2085_v29  ;;  %v2339_v52 = vpop.eup %2338 }
 0x33d   : > { %2348 = vtanh.f32 %v1276_v51 }
 0x33e   : > { %2350 = vtanh.f32 %v1278_v26  ;;  %v1281_v56 = vpop.f32.mrb[36].mxu1 }
 0x33f   : > { %v2341_v59 = vpop.eup %2340  ;;  %v1282_v50 = vadd.f32 %v1281_v56, %v1128_v55  ;;  %v1283_v2 = vpop.f32.mrb[37].mxu1  ;;  %v1976_v56 = vld [vmem:[%s3387_s3 + $0x118] sm:$0xff] }
 0x340   : > { %v2343_v60 = vpop.eup %2342  ;;  %v1284_v63 = vadd.f32 %v1283_v2, %v1128_v55  ;;  %v2089_v4 = vpack.c.bf16 %v2341_v59, %v2337_v30  ;;  %v1973_v30 = vld [vmem:[%s3387_s3 + $0x100] sm:$0xff]  ;;  %v1975_v55 = vld [vmem:[%s3387_s3 + $0x110] sm:$0xff] }
 0x341   : > { %v2087_v31 = vpack.c.bf16 %v2343_v60, %v2339_v52  ;;  %2352 = vtanh.f32 %v1282_v50  ;;  %v1974_v52 = vld [vmem:[%s3387_s3 + $0x108] sm:$0xff]  ;;  %v1977_v59 = vld [vmem:[%s3387_s3 + $0x120] sm:$0xff]  ;;  %v1979_v2 = vld [vmem:[%s3387_s3 + $0x130] sm:$0xff] }
 0x342   : > { %v1287_v8 = vpop.f32.mrb[38].mxu1  ;;  %2354 = vtanh.f32 %v1284_v63  ;;  %v1978_v50 = vld [vmem:[%s3387_s3 + $0x128] sm:$0xff]  ;;  %v1980_v60 = vld [vmem:[%s3387_s3 + $0x138] sm:$0xff]  ;;  %v1981_v63 = vld [vmem:[%s3387_s3 + $0x140] sm:$0xff] }
 0x343   : > { %v1288_v11 = vadd.f32 %v1287_v8, %v1133_v53  ;;  %v1289_v0 = vpop.f32.mrb[39].mxu1  ;;  %2088 = vmatprep.subr.bf16.mxu0 %v2087_v31  ;;  %v2345_v5 = vpop.eup %2344  ;;  %v1983_v31 = vld [vmem:[%s3387_s3 + $0x150] sm:$0xff]  ;;  %v1985_v8 = vld [vmem:[%s3387_s3 + $0x160] sm:$0xff] }
 0x344   : > { %v1290_v13 = vadd.f32 %v1289_v0, %v1133_v53  ;;  %2090 = vmatpush1.bf16.msra.mxu0 %v2089_v4  ;;  %v2347_v15 = vpop.eup %2346  ;;  %v1982_v4 = vld [vmem:[%s3387_s3 + $0x148] sm:$0xff]  ;;  %v1984_v53 = vld [vmem:[%s3387_s3 + $0x158] sm:$0xff]  ;;  %v1987_v0 = vld [vmem:[%s3387_s3 + $0x170] sm:$0xff] }
 0x345   : > { %2356 = vtanh.f32 %v1288_v11  ;;  %v1986_v11 = vld [vmem:[%s3387_s3 + $0x168] sm:$0xff] }
 0x346   : > { %2358 = vtanh.f32 %v1290_v13  ;;  %v1293_v18 = vpop.f32.mrb[40].mxu1  ;;  %v1988_v13 = vld [vmem:[%s3387_s3 + $0x178] sm:$0xff] }
 0x347   : > { %v2349_v19 = vpop.eup %2348  ;;  %v1294_v20 = vadd.f32 %v1293_v18, %v1138_v17  ;;  %v1295_v58 = vpop.f32.mrb[41].mxu1 }
 0x348   : > { %v2351_v6 = vpop.eup %2350  ;;  %v1296_v24 = vadd.f32 %v1295_v58, %v1138_v17  ;;  %v2093_v27 = vpack.c.bf16 %v2349_v19, %v2345_v5  ;;  %v1385_v5 = vpop.permute.xlu0 %1384 }
 0x349   : > { %v2091_v21 = vpack.c.bf16 %v2351_v6, %v2347_v15  ;;  %2360 = vtanh.f32 %v1294_v20  ;;  %v1390_v15 = vpop.permute.xlu1 %1389 }
 0x34a   : > { %v1299_v37 = vpop.f32.mrb[42].mxu1  ;;  %2362 = vtanh.f32 %v1296_v24 }
 0x34b   : > { %v1300_v38 = vadd.f32 %v1299_v37, %v1143_v36  ;;  %v1301_v39 = vpop.f32.mrb[43].mxu1  ;;  %2092 = vmatprep.subr.bf16.mxu0 %v2091_v21  ;;  %v2353_v34 = vpop.eup %2352 }
 0x34c   : > { %v1302_v7 = vadd.f32 %v1301_v39, %v1143_v36  ;;  %2094 = vmatpush1.bf16.msra.mxu0 %v2093_v27  ;;  %v2355_v33 = vpop.eup %2354  ;;  %v1395_v17 = vpop.permute.xlu0 %1394 }
 0x34d   : > { %2364 = vtanh.f32 %v1300_v38  ;;  %v1400_v18 = vpop.permute.xlu1 %1399 }
 0x34e   : > { %2366 = vtanh.f32 %v1302_v7  ;;  %v1305_v54 = vpop.f32.mrb[44].mxu1 }
 0x34f   : > { %v2357_v42 = vpop.eup %2356  ;;  %v1306_v12 = vadd.f32 %v1305_v54, %v1148_v40  ;;  %v1307_v1 = vpop.f32.mrb[45].mxu1 }
 0x350   : > { %v2359_v61 = vpop.eup %2358  ;;  %v1308_v28 = vadd.f32 %v1307_v1, %v1148_v40  ;;  %v2097_v32 = vpack.c.bf16 %v2357_v42, %v2353_v34  ;;  %v1405_v19 = vpop.permute.xlu0 %1404 }
 0x351   : > { %v2095_v41 = vpack.c.bf16 %v2359_v61, %v2355_v33  ;;  %2368 = vtanh.f32 %v1306_v12  ;;  %v1410_v20 = vpop.permute.xlu1 %1409 }
 0x352   : > { %v1311_v43 = vpop.f32.mrb[46].mxu1  ;;  %2370 = vtanh.f32 %v1308_v28 }
 0x353   : > { %v1312_v44 = vadd.f32 %v1311_v43, %v1153_v57  ;;  %v1313_v45 = vpop.f32.mrb[47].mxu1  ;;  %2096 = vmatprep.subr.bf16.mxu0 %v2095_v41  ;;  %v2361_v46 = vpop.eup %2360 }
 0x354   : > { %v1314_v10 = vadd.f32 %v1313_v45, %v1153_v57  ;;  %2098 = vmatpush1.bf16.msra.mxu0 %v2097_v32  ;;  %v2363_v16 = vpop.eup %2362  ;;  %v3302_v58 = vpop.permute.xlu0 %1414 }
 0x355   : > { %2372 = vtanh.f32 %v1312_v44  ;;  %v3304_v6 = vpop.permute.xlu1 %1419 }
 0x356   : > { %2374 = vtanh.f32 %v1314_v10 }
 0x357   : > { %v2365_v14 = vpop.eup %2364 }
 0x358   : > { %v2367_v25 = vpop.eup %2366  ;;  %v2101_v47 = vpack.c.bf16 %v2365_v14, %v2361_v46  ;;  %v1674_v24 = vpop.permute.xlu0 %1673 }
 0x359   : > { %v2099_v29 = vpack.c.bf16 %v2367_v25, %v2363_v16  ;;  %v1679_v21 = vpop.permute.xlu1 %1678 }
 0x35b   : > { %2100 = vmatprep.subr.bf16.mxu0 %v2099_v29  ;;  %v2369_v23 = vpop.eup %2368 }
 0x35c   : > { %2102 = vmatpush1.bf16.msra.mxu0 %v2101_v47  ;;  %v2371_v35 = vpop.eup %2370  ;;  %v3306_v39 = vpop.permute.xlu0 %1424 }
 0x35d   : > { %v1684_v40 = vpop.permute.xlu1 %1683 }
 0x35f   : > { %v2373_v49 = vpop.eup %2372 }
 0x360   : > { %v2375_v51 = vpop.eup %2374  ;;  %v2105_v48 = vpack.c.bf16 %v2373_v49, %v2369_v23  ;;  %v3308_v61 = vpop.permute.xlu0 %1429 }
 0x361   : > { %v2103_v26 = vpack.c.bf16 %v2375_v51, %v2371_v35  ;;  %v1689_v32 = vpop.permute.xlu1 %1688 }
 0x363   : > { %2104 = vmatprep.subr.bf16.mxu0 %v2103_v26 }
 0x364   : > { %2106 = vmatpush1.bf16.msra.mxu0 %v2105_v48  ;;  %v3310_v16 = vpop.permute.xlu0 %1434 }
 0x365   : > { %v1694_v49 = vpop.permute.xlu1 %1693 }
 0x367   : > { %1527 = vmatmul.mubr.f32.vlgmr.msra.gmra.mrb[16].mxu0 %v1973_v30 }
 0x368   : > { %1532 = vmatprep.mubr.f32.mxu0 %v2506_v22 }
 0x36b   : > { %1533 = vmatmul.mubr.f32.gmra.mrb[18].mxu0 %v1974_v52 }
 0x36c   : > { %1538 = vmatprep.mubr.f32.mxu0 %v2506_v22 }
 0x36f   : > { %1539 = vmatmul.mubr.f32.gmra.mrb[20].mxu0 %v1975_v55 }
 0x370   : > { %1544 = vmatprep.mubr.f32.mxu0 %v2506_v22 }
 0x373   : > { %1545 = vmatmul.mubr.f32.gmra.mrb[22].mxu0 %v1976_v56 }
 0x374   : > { %1550 = vmatprep.mubr.f32.mxu0 %v2506_v22 }
 0x377   : > { %1551 = vmatmul.mubr.f32.gmra.mrb[24].mxu0 %v1977_v59 }
 0x378   : > { %1556 = vmatprep.mubr.f32.mxu0 %v2506_v22 }
 0x37b   : > { %1557 = vmatmul.mubr.f32.gmra.mrb[26].mxu0 %v1978_v50 }
 0x37c   : > { %1562 = vmatprep.mubr.f32.mxu0 %v2506_v22 }
 0x37f   : > { %1563 = vmatmul.mubr.f32.gmra.mrb[28].mxu0 %v1979_v2 }
 0x380   : > { %1568 = vmatprep.mubr.f32.mxu0 %v2506_v22 }
 0x383   : > { %1569 = vmatmul.mubr.f32.gmra.mrb[30].mxu0 %v1980_v60 }
 0x384   : > { %1574 = vmatprep.mubr.f32.mxu0 %v2506_v22 }
 0x387   : > { %1575 = vmatmul.mubr.f32.gmra.mrb[32].mxu0 %v1981_v63  ;;  %v3312_v63 = vpop.permute.xlu0 %1439 }
 0x388   : > { %1580 = vmatprep.mubr.f32.mxu0 %v2506_v22 }
 0x38b   : > { %1581 = vmatmul.mubr.f32.gmra.mrb[34].mxu0 %v1982_v4 }
 0x38c   : > { %1586 = vmatprep.mubr.f32.mxu0 %v2506_v22 }
 0x38f   : > { %1587 = vmatmul.mubr.f32.gmra.mrb[36].mxu0 %v1983_v31 }
 0x390   : > { %1592 = vmatprep.mubr.f32.mxu0 %v2506_v22 }
 0x393   : > { %1593 = vmatmul.mubr.f32.gmra.mrb[38].mxu0 %v1984_v53 }
 0x394   : > { %1598 = vmatprep.mubr.f32.mxu0 %v2506_v22 }
 0x397   : > { %1599 = vmatmul.mubr.f32.gmra.mrb[40].mxu0 %v1985_v8 }
 0x398   : > { %1604 = vmatprep.mubr.f32.mxu0 %v2506_v22 }
 0x39b   : > { %1605 = vmatmul.mubr.f32.gmra.mrb[42].mxu0 %v1986_v11  ;;  %v1699_v11 = vpop.permute.xlu1 %1698 }
 0x39c   : > { %1610 = vmatprep.mubr.f32.mxu0 %v2506_v22 }
 0x39f   : > { %1611 = vmatmul.mubr.f32.gmra.mrb[44].mxu0 %v1987_v0 }
 0x3a0   : > { %1616 = vmatprep.mubr.f32.mxu0 %v2506_v22 }
 0x3a3   : > { %1617 = vmatmul.mubr.f32.gmra.mrb[46].mxu0 %v1988_v13 }
 0x43a   : > { %v1528_v27 = vpop.f32.mrb[16].mxu0 }
 0x43b   : > { %v1529_v36 = vadd.f32 %v1528_v27, %v1385_v5  ;;  %v1530_v22 = vpop.f32.mrb[17].mxu0 }
 0x43c   : > { %v1531_v37 = vadd.f32 %v1530_v22, %v1385_v5 }
 0x43d   : > { %2376 = vtanh.f32 %v1529_v36 }
 0x43e   : > { %v1534_v38 = vpop.f32.mrb[18].mxu0  ;;  %2378 = vtanh.f32 %v1531_v37 }
 0x43f   : > { %v1535_v7 = vadd.f32 %v1534_v38, %v1390_v15  ;;  %v1536_v34 = vpop.f32.mrb[19].mxu0 }
 0x440   : > { %v1537_v33 = vadd.f32 %v1536_v34, %v1390_v15 }
 0x441   : > { %2380 = vtanh.f32 %v1535_v7 }
 0x442   : > { %2382 = vtanh.f32 %v1537_v33  ;;  %v1540_v54 = vpop.f32.mrb[20].mxu0  ;;  %v1704_v33 = vpop.permute.xlu1 %1703 }
 0x443   : > { %v1541_v42 = vadd.f32 %v1540_v54, %v1395_v17  ;;  %v1542_v12 = vpop.f32.mrb[21].mxu0 }
 0x444   : > { %v1543_v1 = vadd.f32 %v1542_v12, %v1395_v17 }
 0x445   : > { %2384 = vtanh.f32 %v1541_v42 }
 0x446   : > { %2386 = vtanh.f32 %v1543_v1  ;;  %v1546_v28 = vpop.f32.mrb[22].mxu0 }
 0x447   : > { %v1547_v41 = vadd.f32 %v1546_v28, %v1400_v18  ;;  %v1548_v57 = vpop.f32.mrb[23].mxu0  ;;  %v2377_v44 = vpop.eup %2376 }
 0x448   : > { %v1549_v43 = vadd.f32 %v1548_v57, %v1400_v18  ;;  %v2379_v45 = vpop.eup %2378  ;;  %v1751_v29 = vmul.f32 %v2377_v44, %v1674_v24 }
 0x449   : > { %2388 = vtanh.f32 %v1547_v41  ;;  %v1752_v51 = vmul.f32 %v2379_v45, %v1674_v24 }
 0x44a   : > { %2390 = vtanh.f32 %v1549_v43  ;;  %v1552_v10 = vpop.f32.mrb[24].mxu0 }
 0x44b   : > { %v2381_v46 = vpop.eup %2380  ;;  %v1553_v14 = vadd.f32 %v1552_v10, %v1405_v19  ;;  %v1554_v25 = vpop.f32.mrb[25].mxu0 }
 0x44c   : > { %v2383_v47 = vpop.eup %2382  ;;  %v1753_v23 = vmul.f32 %v2381_v46, %v1679_v21  ;;  %v1555_v35 = vadd.f32 %v1554_v25, %v1405_v19  ;;  %v1709_v46 = vpop.permute.xlu1 %1708 }
 0x44d   : > { %v1754_v48 = vmul.f32 %v2383_v47, %v1679_v21  ;;  %2392 = vtanh.f32 %v1553_v14  ;;  %v3316_v21 = vpop.permute.xlu0 %1444 }
 0x44e   : > { %v1783_v26 = vadd.f32 %v1753_v23, %v1751_v29  ;;  %2394 = vtanh.f32 %v1555_v35  ;;  %v1558_v30 = vpop.f32.mrb[26].mxu0 }
 0x44f   : > { %v2385_v52 = vpop.eup %2384  ;;  %v1804_v55 = vadd.f32 %v1754_v48, %v1752_v51  ;;  %v1559_v56 = vadd.f32 %v1558_v30, %v1410_v20  ;;  %v1560_v59 = vpop.f32.mrb[27].mxu0 }
 0x450   : > { %v2387_v50 = vpop.eup %2386  ;;  %v1755_v2 = vmul.f32 %v2385_v52, %v1684_v40  ;;  %v1561_v60 = vadd.f32 %v1560_v59, %v1410_v20 }
 0x451   : > { %v1756_v4 = vmul.f32 %v2387_v50, %v1684_v40  ;;  %2396 = vtanh.f32 %v1559_v56  ;;  %v3322_v43 = vpop.permute.xlu0 %1449 }
 0x452   : > { %v1784_v31 = vadd.f32 %v1783_v26, %v1755_v2  ;;  %2398 = vtanh.f32 %v1561_v60  ;;  %v1564_v53 = vpop.f32.mrb[28].mxu0  ;;  %v1714_v2 = vpop.permute.xlu1 %1713 }
 0x453   : > { %v2389_v8 = vpop.eup %2388  ;;  %v1805_v0 = vadd.f32 %v1804_v55, %v1756_v4  ;;  %v1565_v13 = vadd.f32 %v1564_v53, %v3302_v58  ;;  %v1566_v5 = vpop.f32.mrb[29].mxu0 }
 0x454   : > { %v2391_v15 = vpop.eup %2390  ;;  %v1757_v17 = vmul.f32 %v2389_v8, %v1689_v32  ;;  %v1567_v18 = vadd.f32 %v1566_v5, %v3302_v58 }
 0x455   : > { %v1758_v19 = vmul.f32 %v2391_v15, %v1689_v32  ;;  %2400 = vtanh.f32 %v1565_v13  ;;  %v1455_v26 = vpop.permute.xlu0 %1454 }
 0x456   : > { %v1785_v20 = vadd.f32 %v1784_v31, %v1757_v17  ;;  %2402 = vtanh.f32 %v1567_v18  ;;  %v1570_v24 = vpop.f32.mrb[30].mxu0 }
 0x457   : > { %v2393_v27 = vpop.eup %2392  ;;  %v1806_v36 = vadd.f32 %v1805_v0, %v1758_v19  ;;  %v1571_v22 = vadd.f32 %v1570_v24, %v3304_v6  ;;  %v1572_v37 = vpop.f32.mrb[31].mxu0 }
 0x458   : > { %v2395_v38 = vpop.eup %2394  ;;  %v1759_v7 = vmul.f32 %v2393_v27, %v1694_v49  ;;  %v1573_v34 = vadd.f32 %v1572_v37, %v3304_v6 }
 0x459   : > { %v1760_v40 = vmul.f32 %v2395_v38, %v1694_v49  ;;  %2404 = vtanh.f32 %v1571_v22  ;;  %v1460_v15 = vpop.permute.xlu0 %1459 }
 0x45a   : > { %v1786_v58 = vadd.f32 %v1785_v20, %v1759_v7  ;;  %2406 = vtanh.f32 %v1573_v34  ;;  %v1576_v54 = vpop.f32.mrb[32].mxu0  ;;  %v1719_v20 = vpop.permute.xlu1 %1718 }
 0x45b   : > { %v2397_v42 = vpop.eup %2396  ;;  %v1807_v12 = vadd.f32 %v1806_v36, %v1760_v40  ;;  %v1577_v1 = vadd.f32 %v1576_v54, %v3306_v39  ;;  %v1578_v28 = vpop.f32.mrb[33].mxu0 }
 0x45c   : > { %v2399_v32 = vpop.eup %2398  ;;  %v1761_v41 = vmul.f32 %v2397_v42, %v1699_v11  ;;  %v1579_v57 = vadd.f32 %v1578_v28, %v3306_v39 }
 0x45d   : > { %v1762_v44 = vmul.f32 %v2399_v32, %v1699_v11  ;;  %2408 = vtanh.f32 %v1577_v1  ;;  %v1724_v40 = vpop.permute.xlu0 %1723 }
 0x45e   : > { %v1787_v6 = vadd.f32 %v1786_v58, %v1761_v41  ;;  %2410 = vtanh.f32 %v1579_v57  ;;  %v1582_v45 = vpop.f32.mrb[34].mxu0 }
 0x45f   : > { %v2401_v10 = vpop.eup %2400  ;;  %v1808_v14 = vadd.f32 %v1807_v12, %v1762_v44  ;;  %v1583_v25 = vadd.f32 %v1582_v45, %v3308_v61  ;;  %v1584_v47 = vpop.f32.mrb[35].mxu0 }
 0x460   : > { %v2403_v29 = vpop.eup %2402  ;;  %v1763_v23 = vmul.f32 %v2401_v10, %v1704_v33  ;;  %v1585_v35 = vadd.f32 %v1584_v47, %v3308_v61  ;;  %v1729_v44 = vpop.permute.xlu1 %1728 }
 0x461   : > { %v1764_v49 = vmul.f32 %v2403_v29, %v1704_v33  ;;  %2412 = vtanh.f32 %v1583_v25 }
 0x462   : > { %v1788_v39 = vadd.f32 %v1787_v6, %v1763_v23  ;;  %2414 = vtanh.f32 %v1585_v35  ;;  %v1588_v51 = vpop.f32.mrb[36].mxu0 }
 0x463   : > { %v2405_v48 = vpop.eup %2404  ;;  %v1809_v30 = vadd.f32 %v1808_v14, %v1764_v49  ;;  %v1589_v52 = vadd.f32 %v1588_v51, %v3310_v16  ;;  %v1590_v55 = vpop.f32.mrb[37].mxu0 }
 0x464   : > { %v2407_v56 = vpop.eup %2406  ;;  %v1765_v59 = vmul.f32 %v2405_v48, %v1709_v46  ;;  %v1591_v50 = vadd.f32 %v1590_v55, %v3310_v16 }
 0x465   : > { %v1766_v60 = vmul.f32 %v2407_v56, %v1709_v46  ;;  %2416 = vtanh.f32 %v1589_v52 }
 0x466   : > { %v1789_v4 = vadd.f32 %v1788_v39, %v1765_v59  ;;  %2418 = vtanh.f32 %v1591_v50  ;;  %v1594_v61 = vpop.f32.mrb[38].mxu0  ;;  %v1739_v50 = vpop.permute.xlu1 %1738 }
 0x467   : > { %v2409_v31 = vpop.eup %2408  ;;  %v1810_v53 = vadd.f32 %v1809_v30, %v1766_v60  ;;  %v1595_v8 = vadd.f32 %v1594_v61, %v3312_v63  ;;  %v1596_v11 = vpop.f32.mrb[39].mxu0 }
 0x468   : > { %v2411_v0 = vpop.eup %2410  ;;  %v1767_v13 = vmul.f32 %v2409_v31, %v1714_v2  ;;  %v1597_v5 = vadd.f32 %v1596_v11, %v3312_v63 }
 0x469   : > { %v1768_v17 = vmul.f32 %v2411_v0, %v1714_v2  ;;  %2420 = vtanh.f32 %v1595_v8 }
 0x46a   : > { %v1790_v18 = vadd.f32 %v1789_v4, %v1767_v13  ;;  %2422 = vtanh.f32 %v1597_v5  ;;  %v1600_v16 = vpop.f32.mrb[40].mxu0 }
 0x46b   : > { %v2413_v19 = vpop.eup %2412  ;;  %v1811_v24 = vadd.f32 %v1810_v53, %v1768_v17  ;;  %v1601_v27 = vadd.f32 %v1600_v16, %v3316_v21  ;;  %v1602_v36 = vpop.f32.mrb[41].mxu0 }
 0x46c   : > { %v2415_v22 = vpop.eup %2414  ;;  %v1769_v37 = vmul.f32 %v2413_v19, %v1719_v20  ;;  %v1603_v38 = vadd.f32 %v1602_v36, %v3316_v21 }
 0x46d   : > { %v1770_v7 = vmul.f32 %v2415_v22, %v1719_v20  ;;  %2424 = vtanh.f32 %v1601_v27 }
 0x46e   : > { %v1791_v34 = vadd.f32 %v1790_v18, %v1769_v37  ;;  %2426 = vtanh.f32 %v1603_v38  ;;  %v1606_v63 = vpop.f32.mrb[42].mxu0 }
 0x46f   : > { %v2417_v33 = vpop.eup %2416  ;;  %v1812_v58 = vadd.f32 %v1811_v24, %v1770_v7  ;;  %v1607_v54 = vadd.f32 %v1606_v63, %v3322_v43  ;;  %v1608_v42 = vpop.f32.mrb[43].mxu0  ;;  %v2507_v63 = vmov 1966171168  }
 0x470   : > { %v2419_v12 = vpop.eup %2418  ;;  %v1771_v1 = vmul.f32 %v2417_v33, %v1724_v40  ;;  %v1609_v28 = vadd.f32 %v1608_v42, %v3322_v43  ;;  %v1734_v43 = vpop.permute.xlu0 %1733  ;;  %v1841_v33 = vunpack.c.l.s4 %v2507_v63 }
 0x471   : > { %v1772_v32 = vmul.f32 %v2419_v12, %v1724_v40  ;;  %2428 = vtanh.f32 %v1607_v54 }
 0x472   : > { %v1792_v41 = vadd.f32 %v1791_v34, %v1771_v1  ;;  %2430 = vtanh.f32 %v1609_v28  ;;  %v1612_v21 = vpop.f32.mrb[44].mxu0  ;;  %v1842_v1 = vunpack.c.0.s8 %v1841_v33 }
 0x473   : > { %v2421_v57 = vpop.eup %2420  ;;  %v1813_v6 = vadd.f32 %v1812_v58, %v1772_v32  ;;  %v1613_v45 = vadd.f32 %v1612_v21, %v1455_v26  ;;  %v1614_v10 = vpop.f32.mrb[45].mxu0 }
 0x474   : > { %v2423_v46 = vpop.eup %2422  ;;  %v1773_v14 = vmul.f32 %v2421_v57, %v1729_v44  ;;  %v1615_v25 = vadd.f32 %v1614_v10, %v1455_v26  ;;  %v1744_v53 = vpop.permute.xlu0 %1743 }
 0x475   : > { %v1774_v47 = vmul.f32 %v2423_v46, %v1729_v44  ;;  %2432 = vtanh.f32 %v1613_v45  ;;  %v1845_v44 = vsub.s32 %v1842_v1, %v2808_v3 }
 0x476   : > { %v1793_v29 = vadd.f32 %v1792_v41, %v1773_v14  ;;  %2434 = vtanh.f32 %v1615_v25  ;;  %v1618_v23 = vpop.f32.mrb[46].mxu0 }
 0x477   : > { %v2425_v35 = vpop.eup %2424  ;;  %v1814_v49 = vadd.f32 %v1813_v6, %v1774_v47  ;;  %v1619_v39 = vadd.f32 %v1618_v23, %v1460_v15  ;;  %v1620_v51 = vpop.f32.mrb[47].mxu0 }
 0x478   : > { %v2427_v48 = vpop.eup %2426  ;;  %v1775_v30 = vmul.f32 %v2425_v35, %v1734_v43  ;;  %v1621_v52 = vadd.f32 %v1620_v51, %v1460_v15  ;;  %v1749_v15 = vpop.permute.xlu1 %1748 }
 0x479   : > { %v1776_v55 = vmul.f32 %v2427_v48, %v1734_v43  ;;  %2436 = vtanh.f32 %v1619_v39  ;;  %v1829_v58 = vpop.permute.xlu0 %1828 }
 0x47a   : > { %v1794_v56 = vadd.f32 %v1793_v29, %v1775_v30  ;;  %2438 = vtanh.f32 %v1621_v52  ;;  %v1834_v28 = vrot.slane %v1829_v58, %v2825_v9 }
 0x47b   : > { %v2429_v59 = vpop.eup %2428  ;;  %v1815_v26 = vadd.f32 %v1814_v49, %v1776_v55 }
 0x47c   : > { %v2431_v2 = vpop.eup %2430  ;;  %v1777_v60 = vmul.f32 %v2429_v59, %v1739_v50 }
 0x47d   : > { %v1778_v4 = vmul.f32 %v2431_v2, %v1739_v50 }
 0x47e   : > { %v1795_v61 = vadd.f32 %v1794_v56, %v1777_v60 }
 0x47f   : > { %v2433_v31 = vpop.eup %2432  ;;  %v1816_v8 = vadd.f32 %v1815_v26, %v1778_v4 }
 0x480   : > { %v2435_v11 = vpop.eup %2434  ;;  %v1779_v0 = vmul.f32 %v2433_v31, %v1744_v53 }
 0x481   : > { %v1780_v13 = vmul.f32 %v2435_v11, %v1744_v53 }
 0x482   : > { %v1796_v5 = vadd.f32 %v1795_v61, %v1779_v0 }
 0x483   : > { %v2437_v17 = vpop.eup %2436  ;;  %v1817_v18 = vadd.f32 %v1816_v8, %v1780_v13 }
 0x484   : > { %v2439_v16 = vpop.eup %2438  ;;  %v1781_v19 = vmul.f32 %v2437_v17, %v1749_v15 }
 0x485   : > { %v1782_v20 = vmul.f32 %v2439_v16, %v1749_v15 }
 0x486   : > { %v1797_v24 = vadd.f32 %v1796_v5, %v1781_v19 }
 0x487   : > { %v1818_v27 = vadd.f32 %v1817_v18, %v1782_v20 }
 0x488   : > { %v1798_v36 = vrot.slane %v1797_v24, 4 }
 0x489   : > { %v1819_v22 = vrot.slane %v1818_v27, 4 }
 0x48a   : > { %v1799_v37 = vadd.f32 %v1798_v36, %v1797_v24 }
 0x48b   : > { %v1820_v38 = vadd.f32 %v1819_v22, %v1818_v27 }
 0x48c   : > { %v1800_v7 = vrot.slane %v1799_v37, 2 }
 0x48d   : > { %v1821_v34 = vrot.slane %v1820_v38, 2 }
 0x48e   : > { %v1801_v40 = vadd.f32 %v1800_v7, %v1799_v37 }
 0x48f   : > { %v1822_v54 = vadd.f32 %v1821_v34, %v1820_v38 }
 0x490   : > { %v1802_v42 = vrot.slane %v1801_v40, 1 }
 0x491   : > { %v1823_v12 = vrot.slane %v1822_v54, 1 }
 0x492   : > { %v1803_v32 = vadd.f32 %v1802_v42, %v1801_v40 }
 0x493   : > { %v1824_v41 = vadd.f32 %v1823_v12, %v1822_v54 }
 0x494   : > { %v1835_v21 = vadd.f32 %v1834_v28, %v1803_v32 }
 0x495   : > { %v1836_v57 = vadd.f32 %v1834_v28, %v1824_v41 }
 0x497   : > { %v1839_v6 = vcombine.low %v1835_v21, %v1836_v57 }
 0x499   : > { %v1846_v45 = vrot.slane %v1839_v6, %v1845_v44 }
 0x49b   : > { %v1853_v10 = vrot.slane %v1846_v45, %v1845_v44 }
 0x49d   : > { %1859 = vst.msk [vmem:[%s274_s30] sm:$0x3] %vm1857_vm0, %v1853_v10 }
 0x49e   : > { %2453 = shalt.err (!%p2450_p3)
}
 0x49f   : > { %s2454_s19 = scalar_lea.hbm %s3342_s14, 32  ;;  %s2458_s23 = scalar_lea.hbm %s3391_s7, 64 }
 0x4a0   : > { %p2455_p4 = scmp.ne.s32.totalorder %s3342_s14, %s2454_s19  ;;  %p2459_p9 = scmp.lt.u32.totalorder %s3342_s14, %s3391_s7 }
 0x4a1   : > { %p2460_p10 = scmp.lt.u32.totalorder %s2458_s23, %s2454_s19  ;;  %p2462_p12 = scmp.lt.u32.totalorder %s2454_s19, %s3342_s14 }
 0x4a2   : > { %p2456_p7 = pnand %p2455_p4, %p2590_p5 }
 0x4a3   : > { %p2461_p11 = por %p2460_p10, %p2459_p9 }
 0x4a4   : > { %p2457_p8 = pneg %p2456_p7 }
 0x4a5   : > { %p2463_p13 = por %p2462_p12, %p2461_p11 }
 0x4a7   : > { %p2464_p0 = pnand %p2463_p13, %p2457_p8 }
 0x4a9   : > { %2467 = shalt.err (!%p2464_p0)
}
 0x4aa   : > { %2123 = dma.vmem_to_hbm [thread:$0]  (%p2590_p5), %s3344_s20, 32, %s3342_s14, %s1861_s15  }
 0x4ab PF: > { %p2129_p1 = scmp.ge.s32.totalorder %s2502_s29, 2  ;;  %s1887_s30 = sand.u32 1, %s2490_s26  }
 0x4ac   : > { %s1888_s9 = scalar_lea.sflag [#allocation4], %s1887_s30 }
 0x4ad   : > { %p2126_p2 = pnand %p2129_p1, %p2594_p6 }
 0x4af   : > { %2485 = dma.done.wait (!%p2126_p2), %s1888_s9, 32  }
 0x4b0   : > { %2487 = vsyncadd (!%p2126_p2), %s1888_s9, 4294967264  ;;  %p19_p3 = scmp.ge.s32.totalorder %s2577_s8, 4   ;;  %s3394_s26 = smov %s2494_s27 }
 0x4b1   : > { %s3395_s27 = smov %s2498_s28  ;;  %s3396_s28 = smov %s2588_s11 }
 0x4b2   : > { %s3397_s29 = smov %s2577_s8  ;;  %21 = sbr.rel (!%p19_p3) target bundleno = 6 (0x6), region = 87 }
 0x4b9   :  { %1893 = vsyncpa [#allocation4], 1 }
 0x4ba   :  { %1895 = vsyncpa [#allocation4 + $0x1], 1 }

</bundles_post_ra>
